<compile_context>
chip_gen: v7x
topology: tpu7x:2x2x1
jax: 0.10.0
libtpu: 0.0.40
codegen_flags: <defaults>
</compile_context>

<pallas_src>
import functools

import jax
import jax.numpy as jnp
import numpy as np
from jax.experimental import pallas as pl
from jax.experimental.pallas import tpu as pltpu


# ----------------------------------------------------------------------------
# In-kernel helpers
# ----------------------------------------------------------------------------
def _silu(z):
    return z * jax.nn.sigmoid(z)


def _lrelu(z):
    return jnp.where(z > 0, z, 0.1 * z)


def _mm(w, x):
    """Channel-major matmul: w [Co, Ci] @ x [Ci, M] -> [Co, M] (f32).

    For tiny Ci (this module: 4-8 channels) use unrolled broadcast-FMAs on the
    VPU instead of the MXU; fall back to the MXU for large Ci.
    """
    co, ci = w.shape
    if ci >= 32:
        return jnp.dot(w, x, preferred_element_type=jnp.float32)
    acc = w[:, 0:1] * x[0:1, :]
    for k in range(1, ci):
        acc = acc + w[:, k:k + 1] * x[k:k + 1, :]
    return acc


# ----------------------------------------------------------------------------
# Fused BottleneckCSP forward (one pallas_call, grid over batch)
# ----------------------------------------------------------------------------
@functools.partial(jax.jit, static_argnames=("shortcut",))
def bottleneck_csp_forward(params, x_nchw, *, shortcut=True):
    N, C1, H, W = x_nchw.shape
    M = H * W
    c_ = params["w1"].shape[0]
    c2 = params["w4a"].shape[0]
    n_b = params["wm1"].shape[0]
    # lane-aligned zero-halo width for the in-kernel 3x3 conv (must be >= W+1)
    P = max(128, ((W + 1 + 127) // 128) * 128)

    def kernel(x_ref, w1_ref, b1_ref, wm1_ref, bm1_ref, wm2_ref, bm2_ref,
               w3_ref, b3_ref, w2_ref, b2_ref, w4a_ref, w4b_ref, b4_ref,
               o_ref, pad_ref):
        f32 = jnp.float32
        X = x_ref[...].astype(f32)                              # [C1, M]

        # cv1: 1x1 conv (+ folded BN) + SiLU
        b = _silu(_mm(w1_ref[...].astype(f32), X) + b1_ref[...].astype(f32))

        # Column-wrap masks for the flattened 3x3 conv (hoisted out of the
        # bottleneck loop).  Vertical boundaries are handled by the zero halo.
        idx = jax.lax.broadcasted_iota(jnp.int32, (c_, M), 1)
        if (W & (W - 1)) == 0:
            col = jnp.bitwise_and(idx, W - 1)                   # W power of 2
        else:
            col = idx % W
        left_ok = col > 0          # tap col offset -1 invalid at w == 0
        right_ok = col < (W - 1)   # tap col offset +1 invalid at w == W-1

        # Zero the halo regions of the scratch slab.  Written every grid step
        # (NOT guarded on program_id) so correctness does not depend on how
        # the "parallel" batch axis is split across TensorCores.
        zpad = jnp.zeros((c_, P), f32)
        pad_ref[:, 0:P] = zpad
        pad_ref[:, P + M:P + M + P] = zpad

        h = b
        for i in range(n_b):
            # m[i].cv1: 1x1 conv (+ folded BN) + SiLU
            t = _silu(_mm(wm1_ref[i].astype(f32), h) + bm1_ref[i].astype(f32))
            # m[i].cv2: 3x3 conv, pad=1 (+ folded BN) + SiLU, on the flat
            # layout: write t into the zero-halo slab, read 9 shifted slices.
            pad_ref[:, P:P + M] = t
            acc = jnp.zeros((c_, M), f32)
            for kh in range(3):
                for kw in range(3):
                    start = P - (W + 1) + kh * W + kw           # static offset
                    tap = pad_ref[:, start:start + M]
                    if kw == 0:
                        tap = jnp.where(left_ok, tap, 0.0)
                    elif kw == 2:
                        tap = jnp.where(right_ok, tap, 0.0)
                    acc = acc + _mm(
                        wm2_ref[i * 9 + kh * 3 + kw].astype(f32), tap)
            u = _silu(acc + bm2_ref[i].astype(f32))
            h = h + u if shortcut else u

        # cv3 / cv2 with the outer BN folded in, then LeakyReLU(0.1)
        y1 = _mm(w3_ref[...].astype(f32), h) + b3_ref[...].astype(f32)
        y2 = _mm(w2_ref[...].astype(f32), X) + b2_ref[...].astype(f32)
        z1 = _lrelu(y1)
        z2 = _lrelu(y2)

        # cv4 on the (virtual) concat: split weight -> no concat materialized
        out = _silu(_mm(w4a_ref[...].astype(f32), z1)
                    + _mm(w4b_ref[...].astype(f32), z2)
                    + b4_ref[...].astype(f32))
        o_ref[...] = out.astype(o_ref.dtype)

    def full_spec(arr):
        zeros = (0,) * arr.ndim
        return pl.BlockSpec(arr.shape, lambda n: zeros)

    weights = (params["w1"], params["b1"], params["wm1"], params["bm1"],
               params["wm2"], params["bm2"], params["w3"], params["b3"],
               params["w2"], params["b2"], params["w4a"], params["w4b"],
               params["b4"])

    x3 = x_nchw.reshape(N, C1, M)                               # free reshape
    out3 = pl.pallas_call(
        kernel,
        out_shape=jax.ShapeDtypeStruct((N, c2, M), x_nchw.dtype),
        grid=(N,),
        in_specs=[pl.BlockSpec((None, C1, M), lambda n: (n, 0, 0))]
                 + [full_spec(w) for w in weights],
        out_specs=pl.BlockSpec((None, c2, M), lambda n: (n, 0, 0)),
        scratch_shapes=[pltpu.VMEM((c_, M + 2 * P), jnp.float32)],
        compiler_params=pltpu.CompilerParams(
            dimension_semantics=("parallel",)),
    )(x3, *weights)
    return out3.reshape(N, c2, H, W)                            # NCHW, free


# ----------------------------------------------------------------------------
# Deterministic eval-mode parameters with BN folded into the weights
# ----------------------------------------------------------------------------
def _fold_bn(key, c, eps=1e-5):
    k1, k2, k3, k4 = jax.random.split(key, 4)
    gamma = 1.0 + 0.1 * jax.random.normal(k1, (c,), jnp.float32)
    beta = 0.1 * jax.random.normal(k2, (c,), jnp.float32)
    mean = 0.05 * jax.random.normal(k3, (c,), jnp.float32)
    var = 1.0 + 0.1 * jax.random.uniform(k4, (c,), jnp.float32)
    scale = gamma / jnp.sqrt(var + eps)
    bias = beta - mean * scale
    return scale, bias


def make_bottleneck_csp_params(key, c1, c2, n=1, e=0.5):
    c_ = int(c2 * e)
    keys = iter(jax.random.split(key, 8 + 4 * n))
    nk = lambda: next(keys)

    def conv_w(k, co, ci, kh=1, kw=1):
        return 0.1 * jax.random.normal(k, (co, ci, kh, kw), jnp.float32)

    # cv1 = Conv(c1, c_, 1): conv + BN + SiLU
    w1 = conv_w(nk(), c_, c1).reshape(c_, c1)
    s1, b1 = _fold_bn(nk(), c_)
    # cv2 / cv3: plain 1x1 convs feeding the outer BN -> fold its halves in
    w2 = conv_w(nk(), c_, c1).reshape(c_, c1)
    w3 = conv_w(nk(), c_, c_).reshape(c_, c_)
    s_bn, b_bn = _fold_bn(nk(), 2 * c_)
    # cv4 = Conv(2c_, c2, 1): conv + BN + SiLU, split into y1/y2 halves
    w4 = conv_w(nk(), c2, 2 * c_).reshape(c2, 2 * c_)
    s4, b4 = _fold_bn(nk(), c2)
    w4f = w4 * s4[:, None]

    # m = n x Bottleneck(c_, c_, e=1.0): Conv1x1 + Conv3x3 (both Conv+BN+SiLU)
    wm1, bm1, wm2, bm2 = [], [], [], []
    for _ in range(n):
        wa = conv_w(nk(), c_, c_).reshape(c_, c_)
        sa, ba = _fold_bn(nk(), c_)
        wm1.append(wa * sa[:, None])
        bm1.append(ba.reshape(c_, 1))
        wb = conv_w(nk(), c_, c_, 3, 3)                   # [Co, Ci, 3, 3]
        sb, bb = _fold_bn(nk(), c_)
        wb = wb * sb[:, None, None, None]
        # tap-major [9, Co, Ci] with tap index t = kh*3 + kw
        wm2.append(jnp.transpose(wb, (2, 3, 0, 1)).reshape(9, c_, c_))
        bm2.append(bb.reshape(c_, 1))

    return dict(
        w1=w1 * s1[:, None], b1=b1.reshape(c_, 1),
        wm1=jnp.stack(wm1), bm1=jnp.stack(bm1),
        wm2=jnp.concatenate(wm2, axis=0), bm2=jnp.stack(bm2),
        w3=w3 * s_bn[:c_, None], b3=b_bn[:c_].reshape(c_, 1),
        w2=w2 * s_bn[c_:, None], b2=b_bn[c_:].reshape(c_, 1),
        w4a=w4f[:, :c_], w4b=w4f[:, c_:], b4=b4.reshape(c2, 1),
    )


# ----------------------------------------------------------------------------
# Pure-JAX (non-Pallas) reference on the same folded parameters, NCHW
# ----------------------------------------------------------------------------
def bottleneck_csp_reference(params, x, *, shortcut=True):
    N, C1, H, W = x.shape
    hp = jax.lax.Precision.HIGHEST

    def conv1x1(w, t, b=None):
        y = jnp.einsum("oc,nchw->nohw", w, t, precision=hp)
        return y if b is None else y + b.reshape(1, -1, 1, 1)

    silu = lambda z: z * jax.nn.sigmoid(z)
    lrelu = lambda z: jnp.where(z > 0, z, 0.1 * z)

    b = silu(conv1x1(params["w1"], x, params["b1"]))
    h = b
    for i in range(params["wm1"].shape[0]):
        t = silu(conv1x1(params["wm1"][i], h, params["bm1"][i]))
        tp = jnp.pad(t, ((0, 0), (0, 0), (1, 1), (1, 1)))
        acc = 0.0
        for kh in range(3):
            for kw in range(3):
                acc = acc + jnp.einsum(
                    "oc,nchw->nohw", params["wm2"][i * 9 + kh * 3 + kw],
                    tp[:, :, kh:kh + H, kw:kw + W], precision=hp)
        u = silu(acc + params["bm2"][i].reshape(1, -1, 1, 1))
        h = h + u if shortcut else u
    z1 = lrelu(conv1x1(params["w3"], h, params["b3"]))
    z2 = lrelu(conv1x1(params["w2"], x, params["b2"]))
    return silu(conv1x1(params["w4a"], z1) + conv1x1(params["w4b"], z2)
                + params["b4"].reshape(1, -1, 1, 1))


if __name__ == "__main__":
    key = jax.random.PRNGKey(0)
    kp, kx = jax.random.split(key)

    N, C1, H, W = 2, 4, 16, 16
    C2 = 8                                  # c_ = int(C2 * 0.5) = 4
    params = make_bottleneck_csp_params(kp, C1, C2, n=1)
    x = jax.random.normal(kx, (N, C1, H, W), jnp.float32)

    out = bottleneck_csp_forward(params, x)
    out = jax.block_until_ready(out)
    assert out.shape == (N, C2, H, W), out.shape

    ref = jax.block_until_ready(bottleneck_csp_reference(params, x))
    np.testing.assert_allclose(np.asarray(out), np.asarray(ref),
                               rtol=1e-3, atol=1e-4)

    print("KERNEL_OK")
</pallas_src>

<mosaic_0001>
module attributes {stable_mosaic.version = 11 : i64} {
  func.func @kernel(%arg0: i32, %arg1: memref<1x4x256xf32, #tpu.memory_space<vmem>>, %arg2: memref<4x4xf32, #tpu.memory_space<vmem>>, %arg3: memref<4x1xf32, #tpu.memory_space<vmem>>, %arg4: memref<1x4x4xf32, #tpu.memory_space<vmem>>, %arg5: memref<1x4x1xf32, #tpu.memory_space<vmem>>, %arg6: memref<9x4x4xf32, #tpu.memory_space<vmem>>, %arg7: memref<1x4x1xf32, #tpu.memory_space<vmem>>, %arg8: memref<4x4xf32, #tpu.memory_space<vmem>>, %arg9: memref<4x1xf32, #tpu.memory_space<vmem>>, %arg10: memref<4x4xf32, #tpu.memory_space<vmem>>, %arg11: memref<4x1xf32, #tpu.memory_space<vmem>>, %arg12: memref<8x4xf32, #tpu.memory_space<vmem>>, %arg13: memref<8x4xf32, #tpu.memory_space<vmem>>, %arg14: memref<8x1xf32, #tpu.memory_space<vmem>>, %arg15: memref<1x8x256xf32, #tpu.memory_space<vmem>>, %arg16: memref<4x512xf32, #tpu.memory_space<vmem>>) attributes {dimension_semantics = [#tpu.dimension_semantics<parallel>], iteration_bounds = array<i64: 2>, scalar_prefetch = 0 : i64, scratch_operands = 1 : i64, tpu.core_type = #tpu.core_type<tc>, window_params = [{transform_indices = @transform_0, window_bounds = array<i64: 1, 4, 256>}, {pipeline_mode = #tpu.pipeline_mode<synchronous>, transform_indices = @transform_1, window_bounds = array<i64: 4, 4>}, {pipeline_mode = #tpu.pipeline_mode<synchronous>, transform_indices = @transform_2, window_bounds = array<i64: 4, 1>}, {pipeline_mode = #tpu.pipeline_mode<synchronous>, transform_indices = @transform_3, window_bounds = array<i64: 1, 4, 4>}, {pipeline_mode = #tpu.pipeline_mode<synchronous>, transform_indices = @transform_4, window_bounds = array<i64: 1, 4, 1>}, {pipeline_mode = #tpu.pipeline_mode<synchronous>, transform_indices = @transform_5, window_bounds = array<i64: 9, 4, 4>}, {pipeline_mode = #tpu.pipeline_mode<synchronous>, transform_indices = @transform_6, window_bounds = array<i64: 1, 4, 1>}, {pipeline_mode = #tpu.pipeline_mode<synchronous>, transform_indices = @transform_7, window_bounds = array<i64: 4, 4>}, {pipeline_mode = #tpu.pipeline_mode<synchronous>, transform_indices = @transform_8, window_bounds = array<i64: 4, 1>}, {pipeline_mode = #tpu.pipeline_mode<synchronous>, transform_indices = @transform_9, window_bounds = array<i64: 4, 4>}, {pipeline_mode = #tpu.pipeline_mode<synchronous>, transform_indices = @transform_10, window_bounds = array<i64: 4, 1>}, {pipeline_mode = #tpu.pipeline_mode<synchronous>, transform_indices = @transform_11, window_bounds = array<i64: 8, 4>}, {pipeline_mode = #tpu.pipeline_mode<synchronous>, transform_indices = @transform_12, window_bounds = array<i64: 8, 4>}, {pipeline_mode = #tpu.pipeline_mode<synchronous>, transform_indices = @transform_13, window_bounds = array<i64: 8, 1>}, {transform_indices = @transform_14, window_bounds = array<i64: 1, 8, 256>}]} {
    %c0 = arith.constant 0 : index
    %c0_0 = arith.constant 0 : index
    %c0_1 = arith.constant 0 : index
    %0 = vector.load %arg1[%c0, %c0_0, %c0_1] : memref<1x4x256xf32, #tpu.memory_space<vmem>>, vector<1x4x256xf32>
    %1 = vector.shape_cast %0 : vector<1x4x256xf32> to vector<4x256xf32>
    %c0_2 = arith.constant 0 : index
    %c0_3 = arith.constant 0 : index
    %2 = vector.load %arg2[%c0_2, %c0_3] : memref<4x4xf32, #tpu.memory_space<vmem>>, vector<4x4xf32>
    %3 = vector.extract_strided_slice %2 {offsets = [0, 0], sizes = [4, 1], strides = [1, 1]} : vector<4x4xf32> to vector<4x1xf32>
    %4 = vector.extract_strided_slice %1 {offsets = [0, 0], sizes = [1, 256], strides = [1, 1]} : vector<4x256xf32> to vector<1x256xf32>
    %5 = vector.broadcast %3 : vector<4x1xf32> to vector<4x256xf32>
    %6 = vector.broadcast %4 : vector<1x256xf32> to vector<4x256xf32>
    %7 = arith.mulf %5, %6 : vector<4x256xf32>
    %8 = vector.extract_strided_slice %2 {offsets = [0, 1], sizes = [4, 1], strides = [1, 1]} : vector<4x4xf32> to vector<4x1xf32>
    %9 = vector.extract_strided_slice %1 {offsets = [1, 0], sizes = [1, 256], strides = [1, 1]} : vector<4x256xf32> to vector<1x256xf32>
    %10 = vector.broadcast %8 : vector<4x1xf32> to vector<4x256xf32>
    %11 = vector.broadcast %9 : vector<1x256xf32> to vector<4x256xf32>
    %12 = arith.mulf %10, %11 : vector<4x256xf32>
    %13 = arith.addf %7, %12 : vector<4x256xf32>
    %14 = vector.extract_strided_slice %2 {offsets = [0, 2], sizes = [4, 1], strides = [1, 1]} : vector<4x4xf32> to vector<4x1xf32>
    %15 = vector.extract_strided_slice %1 {offsets = [2, 0], sizes = [1, 256], strides = [1, 1]} : vector<4x256xf32> to vector<1x256xf32>
    %16 = vector.broadcast %14 : vector<4x1xf32> to vector<4x256xf32>
    %17 = vector.broadcast %15 : vector<1x256xf32> to vector<4x256xf32>
    %18 = arith.mulf %16, %17 : vector<4x256xf32>
    %19 = arith.addf %13, %18 : vector<4x256xf32>
    %20 = vector.extract_strided_slice %2 {offsets = [0, 3], sizes = [4, 1], strides = [1, 1]} : vector<4x4xf32> to vector<4x1xf32>
    %21 = vector.extract_strided_slice %1 {offsets = [3, 0], sizes = [1, 256], strides = [1, 1]} : vector<4x256xf32> to vector<1x256xf32>
    %22 = vector.broadcast %20 : vector<4x1xf32> to vector<4x256xf32>
    %23 = vector.broadcast %21 : vector<1x256xf32> to vector<4x256xf32>
    %24 = arith.mulf %22, %23 : vector<4x256xf32>
    %25 = arith.addf %19, %24 : vector<4x256xf32>
    %c0_4 = arith.constant 0 : index
    %c0_5 = arith.constant 0 : index
    %26 = vector.load %arg3[%c0_4, %c0_5] : memref<4x1xf32, #tpu.memory_space<vmem>>, vector<4x1xf32>
    %27 = vector.broadcast %26 : vector<4x1xf32> to vector<4x256xf32>
    %28 = arith.addf %25, %27 : vector<4x256xf32>
    %29 = arith.negf %28 : vector<4x256xf32>
    %30 = math.exp %29 : vector<4x256xf32>
    %cst = arith.constant 1.000000e+00 : f32
    %31 = vector.broadcast %cst : f32 to vector<4x256xf32>
    %32 = arith.addf %31, %30 : vector<4x256xf32>
    %33 = arith.divf %31, %32 : vector<4x256xf32>
    %34 = arith.mulf %28, %33 : vector<4x256xf32>
    %35 = tpu.iota {dimensions = array<i32: 1>} : vector<4x256xi32>
    %c15_i32 = arith.constant 15 : i32
    %36 = vector.broadcast %c15_i32 : i32 to vector<4x256xi32>
    %37 = arith.andi %35, %36 : vector<4x256xi32>
    %c0_i32 = arith.constant 0 : i32
    %38 = vector.broadcast %c0_i32 : i32 to vector<4x256xi32>
    %39 = arith.cmpi sgt, %37, %38 : vector<4x256xi32>
    %c15_i32_6 = arith.constant 15 : i32
    %40 = vector.broadcast %c15_i32_6 : i32 to vector<4x256xi32>
    %41 = arith.cmpi slt, %37, %40 : vector<4x256xi32>
    %cst_7 = arith.constant 0.000000e+00 : f32
    %42 = vector.broadcast %cst_7 : f32 to vector<4x128xf32>
    %c0_8 = arith.constant 0 : index
    %c0_9 = arith.constant 0 : index
    %43 = vector.load %arg16[%c0_8, %c0_9] : memref<4x512xf32, #tpu.memory_space<vmem>>, vector<4x128xf32>
    tpu.vector_store %arg16[%c0_8, %c0_9], %42 {strides = array<i32>} : memref<4x512xf32, #tpu.memory_space<vmem>>, vector<4x128xf32>,
    %c0_10 = arith.constant 0 : index
    %c384 = arith.constant 384 : index
    %44 = vector.load %arg16[%c0_10, %c384] : memref<4x512xf32, #tpu.memory_space<vmem>>, vector<4x128xf32>
    tpu.vector_store %arg16[%c0_10, %c384], %42 {strides = array<i32>} : memref<4x512xf32, #tpu.memory_space<vmem>>, vector<4x128xf32>,
    %c0_11 = arith.constant 0 : index
    %c0_12 = arith.constant 0 : index
    %c0_13 = arith.constant 0 : index
    %45 = vector.load %arg4[%c0_11, %c0_12, %c0_13] : memref<1x4x4xf32, #tpu.memory_space<vmem>>, vector<1x4x4xf32>
    %46 = vector.shape_cast %45 : vector<1x4x4xf32> to vector<4x4xf32>
    %47 = vector.extract_strided_slice %46 {offsets = [0, 0], sizes = [4, 1], strides = [1, 1]} : vector<4x4xf32> to vector<4x1xf32>
    %48 = vector.extract_strided_slice %34 {offsets = [0, 0], sizes = [1, 256], strides = [1, 1]} : vector<4x256xf32> to vector<1x256xf32>
    %49 = vector.broadcast %47 : vector<4x1xf32> to vector<4x256xf32>
    %50 = vector.broadcast %48 : vector<1x256xf32> to vector<4x256xf32>
    %51 = arith.mulf %49, %50 : vector<4x256xf32>
    %52 = vector.extract_strided_slice %46 {offsets = [0, 1], sizes = [4, 1], strides = [1, 1]} : vector<4x4xf32> to vector<4x1xf32>
    %53 = vector.extract_strided_slice %34 {offsets = [1, 0], sizes = [1, 256], strides = [1, 1]} : vector<4x256xf32> to vector<1x256xf32>
    %54 = vector.broadcast %52 : vector<4x1xf32> to vector<4x256xf32>
    %55 = vector.broadcast %53 : vector<1x256xf32> to vector<4x256xf32>
    %56 = arith.mulf %54, %55 : vector<4x256xf32>
    %57 = arith.addf %51, %56 : vector<4x256xf32>
    %58 = vector.extract_strided_slice %46 {offsets = [0, 2], sizes = [4, 1], strides = [1, 1]} : vector<4x4xf32> to vector<4x1xf32>
    %59 = vector.extract_strided_slice %34 {offsets = [2, 0], sizes = [1, 256], strides = [1, 1]} : vector<4x256xf32> to vector<1x256xf32>
    %60 = vector.broadcast %58 : vector<4x1xf32> to vector<4x256xf32>
    %61 = vector.broadcast %59 : vector<1x256xf32> to vector<4x256xf32>
    %62 = arith.mulf %60, %61 : vector<4x256xf32>
    %63 = arith.addf %57, %62 : vector<4x256xf32>
    %64 = vector.extract_strided_slice %46 {offsets = [0, 3], sizes = [4, 1], strides = [1, 1]} : vector<4x4xf32> to vector<4x1xf32>
    %65 = vector.extract_strided_slice %34 {offsets = [3, 0], sizes = [1, 256], strides = [1, 1]} : vector<4x256xf32> to vector<1x256xf32>
    %66 = vector.broadcast %64 : vector<4x1xf32> to vector<4x256xf32>
    %67 = vector.broadcast %65 : vector<1x256xf32> to vector<4x256xf32>
    %68 = arith.mulf %66, %67 : vector<4x256xf32>
    %69 = arith.addf %63, %68 : vector<4x256xf32>
    %c0_14 = arith.constant 0 : index
    %c0_15 = arith.constant 0 : index
    %c0_16 = arith.constant 0 : index
    %70 = vector.load %arg5[%c0_14, %c0_15, %c0_16] : memref<1x4x1xf32, #tpu.memory_space<vmem>>, vector<1x4x1xf32>
    %71 = vector.shape_cast %70 : vector<1x4x1xf32> to vector<4x1xf32>
    %72 = vector.broadcast %71 : vector<4x1xf32> to vector<4x256xf32>
    %73 = arith.addf %69, %72 : vector<4x256xf32>
    %74 = arith.negf %73 : vector<4x256xf32>
    %75 = math.exp %74 : vector<4x256xf32>
    %cst_17 = arith.constant 1.000000e+00 : f32
    %76 = vector.broadcast %cst_17 : f32 to vector<4x256xf32>
    %77 = arith.addf %76, %75 : vector<4x256xf32>
    %78 = arith.divf %76, %77 : vector<4x256xf32>
    %79 = arith.mulf %73, %78 : vector<4x256xf32>
    %c0_18 = arith.constant 0 : index
    %c128 = arith.constant 128 : index
    %80 = vector.load %arg16[%c0_18, %c128] : memref<4x512xf32, #tpu.memory_space<vmem>>, vector<4x256xf32>
    tpu.vector_store %arg16[%c0_18, %c128], %79 {strides = array<i32>} : memref<4x512xf32, #tpu.memory_space<vmem>>, vector<4x256xf32>,
    %cst_19 = arith.constant 0.000000e+00 : f32
    %81 = vector.broadcast %cst_19 : f32 to vector<4x256xf32>
    %c0_20 = arith.constant 0 : index
    %c111 = arith.constant 111 : index
    %82 = vector.load %arg16[%c0_20, %c111] : memref<4x512xf32, #tpu.memory_space<vmem>>, vector<4x256xf32>
    %cst_21 = arith.constant 0.000000e+00 : f32
    %83 = vector.broadcast %cst_21 : f32 to vector<4x256xf32>
    %84 = arith.select %39, %82, %83 : vector<4x256xi1>, vector<4x256xf32>
    %c0_22 = arith.constant 0 : index
    %c0_23 = arith.constant 0 : index
    %c0_24 = arith.constant 0 : index
    %85 = vector.load %arg6[%c0_22, %c0_23, %c0_24] : memref<9x4x4xf32, #tpu.memory_space<vmem>>, vector<1x4x4xf32>
    %86 = vector.shape_cast %85 : vector<1x4x4xf32> to vector<4x4xf32>
    %87 = vector.extract_strided_slice %86 {offsets = [0, 0], sizes = [4, 1], strides = [1, 1]} : vector<4x4xf32> to vector<4x1xf32>
    %88 = vector.extract_strided_slice %84 {offsets = [0, 0], sizes = [1, 256], strides = [1, 1]} : vector<4x256xf32> to vector<1x256xf32>
    %89 = vector.broadcast %87 : vector<4x1xf32> to vector<4x256xf32>
    %90 = vector.broadcast %88 : vector<1x256xf32> to vector<4x256xf32>
    %91 = arith.mulf %89, %90 : vector<4x256xf32>
    %92 = vector.extract_strided_slice %86 {offsets = [0, 1], sizes = [4, 1], strides = [1, 1]} : vector<4x4xf32> to vector<4x1xf32>
    %93 = vector.extract_strided_slice %84 {offsets = [1, 0], sizes = [1, 256], strides = [1, 1]} : vector<4x256xf32> to vector<1x256xf32>
    %94 = vector.broadcast %92 : vector<4x1xf32> to vector<4x256xf32>
    %95 = vector.broadcast %93 : vector<1x256xf32> to vector<4x256xf32>
    %96 = arith.mulf %94, %95 : vector<4x256xf32>
    %97 = arith.addf %91, %96 : vector<4x256xf32>
    %98 = vector.extract_strided_slice %86 {offsets = [0, 2], sizes = [4, 1], strides = [1, 1]} : vector<4x4xf32> to vector<4x1xf32>
    %99 = vector.extract_strided_slice %84 {offsets = [2, 0], sizes = [1, 256], strides = [1, 1]} : vector<4x256xf32> to vector<1x256xf32>
    %100 = vector.broadcast %98 : vector<4x1xf32> to vector<4x256xf32>
    %101 = vector.broadcast %99 : vector<1x256xf32> to vector<4x256xf32>
    %102 = arith.mulf %100, %101 : vector<4x256xf32>
    %103 = arith.addf %97, %102 : vector<4x256xf32>
    %104 = vector.extract_strided_slice %86 {offsets = [0, 3], sizes = [4, 1], strides = [1, 1]} : vector<4x4xf32> to vector<4x1xf32>
    %105 = vector.extract_strided_slice %84 {offsets = [3, 0], sizes = [1, 256], strides = [1, 1]} : vector<4x256xf32> to vector<1x256xf32>
    %106 = vector.broadcast %104 : vector<4x1xf32> to vector<4x256xf32>
    %107 = vector.broadcast %105 : vector<1x256xf32> to vector<4x256xf32>
    %108 = arith.mulf %106, %107 : vector<4x256xf32>
    %109 = arith.addf %103, %108 : vector<4x256xf32>
    %110 = arith.addf %81, %109 : vector<4x256xf32>
    %c0_25 = arith.constant 0 : index
    %c112 = arith.constant 112 : index
    %111 = vector.load %arg16[%c0_25, %c112] : memref<4x512xf32, #tpu.memory_space<vmem>>, vector<4x256xf32>
    %c1 = arith.constant 1 : index
    %c0_26 = arith.constant 0 : index
    %c0_27 = arith.constant 0 : index
    %112 = vector.load %arg6[%c1, %c0_26, %c0_27] : memref<9x4x4xf32, #tpu.memory_space<vmem>>, vector<1x4x4xf32>
    %113 = vector.shape_cast %112 : vector<1x4x4xf32> to vector<4x4xf32>
    %114 = vector.extract_strided_slice %113 {offsets = [0, 0], sizes = [4, 1], strides = [1, 1]} : vector<4x4xf32> to vector<4x1xf32>
    %115 = vector.extract_strided_slice %111 {offsets = [0, 0], sizes = [1, 256], strides = [1, 1]} : vector<4x256xf32> to vector<1x256xf32>
    %116 = vector.broadcast %114 : vector<4x1xf32> to vector<4x256xf32>
    %117 = vector.broadcast %115 : vector<1x256xf32> to vector<4x256xf32>
    %118 = arith.mulf %116, %117 : vector<4x256xf32>
    %119 = vector.extract_strided_slice %113 {offsets = [0, 1], sizes = [4, 1], strides = [1, 1]} : vector<4x4xf32> to vector<4x1xf32>
    %120 = vector.extract_strided_slice %111 {offsets = [1, 0], sizes = [1, 256], strides = [1, 1]} : vector<4x256xf32> to vector<1x256xf32>
    %121 = vector.broadcast %119 : vector<4x1xf32> to vector<4x256xf32>
    %122 = vector.broadcast %120 : vector<1x256xf32> to vector<4x256xf32>
    %123 = arith.mulf %121, %122 : vector<4x256xf32>
    %124 = arith.addf %118, %123 : vector<4x256xf32>
    %125 = vector.extract_strided_slice %113 {offsets = [0, 2], sizes = [4, 1], strides = [1, 1]} : vector<4x4xf32> to vector<4x1xf32>
    %126 = vector.extract_strided_slice %111 {offsets = [2, 0], sizes = [1, 256], strides = [1, 1]} : vector<4x256xf32> to vector<1x256xf32>
    %127 = vector.broadcast %125 : vector<4x1xf32> to vector<4x256xf32>
    %128 = vector.broadcast %126 : vector<1x256xf32> to vector<4x256xf32>
    %129 = arith.mulf %127, %128 : vector<4x256xf32>
    %130 = arith.addf %124, %129 : vector<4x256xf32>
    %131 = vector.extract_strided_slice %113 {offsets = [0, 3], sizes = [4, 1], strides = [1, 1]} : vector<4x4xf32> to vector<4x1xf32>
    %132 = vector.extract_strided_slice %111 {offsets = [3, 0], sizes = [1, 256], strides = [1, 1]} : vector<4x256xf32> to vector<1x256xf32>
    %133 = vector.broadcast %131 : vector<4x1xf32> to vector<4x256xf32>
    %134 = vector.broadcast %132 : vector<1x256xf32> to vector<4x256xf32>
    %135 = arith.mulf %133, %134 : vector<4x256xf32>
    %136 = arith.addf %130, %135 : vector<4x256xf32>
    %137 = arith.addf %110, %136 : vector<4x256xf32>
    %c0_28 = arith.constant 0 : index
    %c113 = arith.constant 113 : index
    %138 = vector.load %arg16[%c0_28, %c113] : memref<4x512xf32, #tpu.memory_space<vmem>>, vector<4x256xf32>
    %cst_29 = arith.constant 0.000000e+00 : f32
    %139 = vector.broadcast %cst_29 : f32 to vector<4x256xf32>
    %140 = arith.select %41, %138, %139 : vector<4x256xi1>, vector<4x256xf32>
    %c2 = arith.constant 2 : index
    %c0_30 = arith.constant 0 : index
    %c0_31 = arith.constant 0 : index
    %141 = vector.load %arg6[%c2, %c0_30, %c0_31] : memref<9x4x4xf32, #tpu.memory_space<vmem>>, vector<1x4x4xf32>
    %142 = vector.shape_cast %141 : vector<1x4x4xf32> to vector<4x4xf32>
    %143 = vector.extract_strided_slice %142 {offsets = [0, 0], sizes = [4, 1], strides = [1, 1]} : vector<4x4xf32> to vector<4x1xf32>
    %144 = vector.extract_strided_slice %140 {offsets = [0, 0], sizes = [1, 256], strides = [1, 1]} : vector<4x256xf32> to vector<1x256xf32>
    %145 = vector.broadcast %143 : vector<4x1xf32> to vector<4x256xf32>
    %146 = vector.broadcast %144 : vector<1x256xf32> to vector<4x256xf32>
    %147 = arith.mulf %145, %146 : vector<4x256xf32>
    %148 = vector.extract_strided_slice %142 {offsets = [0, 1], sizes = [4, 1], strides = [1, 1]} : vector<4x4xf32> to vector<4x1xf32>
    %149 = vector.extract_strided_slice %140 {offsets = [1, 0], sizes = [1, 256], strides = [1, 1]} : vector<4x256xf32> to vector<1x256xf32>
    %150 = vector.broadcast %148 : vector<4x1xf32> to vector<4x256xf32>
    %151 = vector.broadcast %149 : vector<1x256xf32> to vector<4x256xf32>
    %152 = arith.mulf %150, %151 : vector<4x256xf32>
    %153 = arith.addf %147, %152 : vector<4x256xf32>
    %154 = vector.extract_strided_slice %142 {offsets = [0, 2], sizes = [4, 1], strides = [1, 1]} : vector<4x4xf32> to vector<4x1xf32>
    %155 = vector.extract_strided_slice %140 {offsets = [2, 0], sizes = [1, 256], strides = [1, 1]} : vector<4x256xf32> to vector<1x256xf32>
    %156 = vector.broadcast %154 : vector<4x1xf32> to vector<4x256xf32>
    %157 = vector.broadcast %155 : vector<1x256xf32> to vector<4x256xf32>
    %158 = arith.mulf %156, %157 : vector<4x256xf32>
    %159 = arith.addf %153, %158 : vector<4x256xf32>
    %160 = vector.extract_strided_slice %142 {offsets = [0, 3], sizes = [4, 1], strides = [1, 1]} : vector<4x4xf32> to vector<4x1xf32>
    %161 = vector.extract_strided_slice %140 {offsets = [3, 0], sizes = [1, 256], strides = [1, 1]} : vector<4x256xf32> to vector<1x256xf32>
    %162 = vector.broadcast %160 : vector<4x1xf32> to vector<4x256xf32>
    %163 = vector.broadcast %161 : vector<1x256xf32> to vector<4x256xf32>
    %164 = arith.mulf %162, %163 : vector<4x256xf32>
    %165 = arith.addf %159, %164 : vector<4x256xf32>
    %166 = arith.addf %137, %165 : vector<4x256xf32>
    %c0_32 = arith.constant 0 : index
    %c127 = arith.constant 127 : index
    %167 = vector.load %arg16[%c0_32, %c127] : memref<4x512xf32, #tpu.memory_space<vmem>>, vector<4x256xf32>
    %cst_33 = arith.constant 0.000000e+00 : f32
    %168 = vector.broadcast %cst_33 : f32 to vector<4x256xf32>
    %169 = arith.select %39, %167, %168 : vector<4x256xi1>, vector<4x256xf32>
    %c3 = arith.constant 3 : index
    %c0_34 = arith.constant 0 : index
    %c0_35 = arith.constant 0 : index
    %170 = vector.load %arg6[%c3, %c0_34, %c0_35] : memref<9x4x4xf32, #tpu.memory_space<vmem>>, vector<1x4x4xf32>
    %171 = vector.shape_cast %170 : vector<1x4x4xf32> to vector<4x4xf32>
    %172 = vector.extract_strided_slice %171 {offsets = [0, 0], sizes = [4, 1], strides = [1, 1]} : vector<4x4xf32> to vector<4x1xf32>
    %173 = vector.extract_strided_slice %169 {offsets = [0, 0], sizes = [1, 256], strides = [1, 1]} : vector<4x256xf32> to vector<1x256xf32>
    %174 = vector.broadcast %172 : vector<4x1xf32> to vector<4x256xf32>
    %175 = vector.broadcast %173 : vector<1x256xf32> to vector<4x256xf32>
    %176 = arith.mulf %174, %175 : vector<4x256xf32>
    %177 = vector.extract_strided_slice %171 {offsets = [0, 1], sizes = [4, 1], strides = [1, 1]} : vector<4x4xf32> to vector<4x1xf32>
    %178 = vector.extract_strided_slice %169 {offsets = [1, 0], sizes = [1, 256], strides = [1, 1]} : vector<4x256xf32> to vector<1x256xf32>
    %179 = vector.broadcast %177 : vector<4x1xf32> to vector<4x256xf32>
    %180 = vector.broadcast %178 : vector<1x256xf32> to vector<4x256xf32>
    %181 = arith.mulf %179, %180 : vector<4x256xf32>
    %182 = arith.addf %176, %181 : vector<4x256xf32>
    %183 = vector.extract_strided_slice %171 {offsets = [0, 2], sizes = [4, 1], strides = [1, 1]} : vector<4x4xf32> to vector<4x1xf32>
    %184 = vector.extract_strided_slice %169 {offsets = [2, 0], sizes = [1, 256], strides = [1, 1]} : vector<4x256xf32> to vector<1x256xf32>
    %185 = vector.broadcast %183 : vector<4x1xf32> to vector<4x256xf32>
    %186 = vector.broadcast %184 : vector<1x256xf32> to vector<4x256xf32>
    %187 = arith.mulf %185, %186 : vector<4x256xf32>
    %188 = arith.addf %182, %187 : vector<4x256xf32>
    %189 = vector.extract_strided_slice %171 {offsets = [0, 3], sizes = [4, 1], strides = [1, 1]} : vector<4x4xf32> to vector<4x1xf32>
    %190 = vector.extract_strided_slice %169 {offsets = [3, 0], sizes = [1, 256], strides = [1, 1]} : vector<4x256xf32> to vector<1x256xf32>
    %191 = vector.broadcast %189 : vector<4x1xf32> to vector<4x256xf32>
    %192 = vector.broadcast %190 : vector<1x256xf32> to vector<4x256xf32>
    %193 = arith.mulf %191, %192 : vector<4x256xf32>
    %194 = arith.addf %188, %193 : vector<4x256xf32>
    %195 = arith.addf %166, %194 : vector<4x256xf32>
    %c0_36 = arith.constant 0 : index
    %c128_37 = arith.constant 128 : index
    %196 = vector.load %arg16[%c0_36, %c128_37] : memref<4x512xf32, #tpu.memory_space<vmem>>, vector<4x256xf32>
    %c4 = arith.constant 4 : index
    %c0_38 = arith.constant 0 : index
    %c0_39 = arith.constant 0 : index
    %197 = vector.load %arg6[%c4, %c0_38, %c0_39] : memref<9x4x4xf32, #tpu.memory_space<vmem>>, vector<1x4x4xf32>
    %198 = vector.shape_cast %197 : vector<1x4x4xf32> to vector<4x4xf32>
    %199 = vector.extract_strided_slice %198 {offsets = [0, 0], sizes = [4, 1], strides = [1, 1]} : vector<4x4xf32> to vector<4x1xf32>
    %200 = vector.extract_strided_slice %196 {offsets = [0, 0], sizes = [1, 256], strides = [1, 1]} : vector<4x256xf32> to vector<1x256xf32>
    %201 = vector.broadcast %199 : vector<4x1xf32> to vector<4x256xf32>
    %202 = vector.broadcast %200 : vector<1x256xf32> to vector<4x256xf32>
    %203 = arith.mulf %201, %202 : vector<4x256xf32>
    %204 = vector.extract_strided_slice %198 {offsets = [0, 1], sizes = [4, 1], strides = [1, 1]} : vector<4x4xf32> to vector<4x1xf32>
    %205 = vector.extract_strided_slice %196 {offsets = [1, 0], sizes = [1, 256], strides = [1, 1]} : vector<4x256xf32> to vector<1x256xf32>
    %206 = vector.broadcast %204 : vector<4x1xf32> to vector<4x256xf32>
    %207 = vector.broadcast %205 : vector<1x256xf32> to vector<4x256xf32>
    %208 = arith.mulf %206, %207 : vector<4x256xf32>
    %209 = arith.addf %203, %208 : vector<4x256xf32>
    %210 = vector.extract_strided_slice %198 {offsets = [0, 2], sizes = [4, 1], strides = [1, 1]} : vector<4x4xf32> to vector<4x1xf32>
    %211 = vector.extract_strided_slice %196 {offsets = [2, 0], sizes = [1, 256], strides = [1, 1]} : vector<4x256xf32> to vector<1x256xf32>
    %212 = vector.broadcast %210 : vector<4x1xf32> to vector<4x256xf32>
    %213 = vector.broadcast %211 : vector<1x256xf32> to vector<4x256xf32>
    %214 = arith.mulf %212, %213 : vector<4x256xf32>
    %215 = arith.addf %209, %214 : vector<4x256xf32>
    %216 = vector.extract_strided_slice %198 {offsets = [0, 3], sizes = [4, 1], strides = [1, 1]} : vector<4x4xf32> to vector<4x1xf32>
    %217 = vector.extract_strided_slice %196 {offsets = [3, 0], sizes = [1, 256], strides = [1, 1]} : vector<4x256xf32> to vector<1x256xf32>
    %218 = vector.broadcast %216 : vector<4x1xf32> to vector<4x256xf32>
    %219 = vector.broadcast %217 : vector<1x256xf32> to vector<4x256xf32>
    %220 = arith.mulf %218, %219 : vector<4x256xf32>
    %221 = arith.addf %215, %220 : vector<4x256xf32>
    %222 = arith.addf %195, %221 : vector<4x256xf32>
    %c0_40 = arith.constant 0 : index
    %c129 = arith.constant 129 : index
    %223 = vector.load %arg16[%c0_40, %c129] : memref<4x512xf32, #tpu.memory_space<vmem>>, vector<4x256xf32>
    %cst_41 = arith.constant 0.000000e+00 : f32
    %224 = vector.broadcast %cst_41 : f32 to vector<4x256xf32>
    %225 = arith.select %41, %223, %224 : vector<4x256xi1>, vector<4x256xf32>
    %c5 = arith.constant 5 : index
    %c0_42 = arith.constant 0 : index
    %c0_43 = arith.constant 0 : index
    %226 = vector.load %arg6[%c5, %c0_42, %c0_43] : memref<9x4x4xf32, #tpu.memory_space<vmem>>, vector<1x4x4xf32>
    %227 = vector.shape_cast %226 : vector<1x4x4xf32> to vector<4x4xf32>
    %228 = vector.extract_strided_slice %227 {offsets = [0, 0], sizes = [4, 1], strides = [1, 1]} : vector<4x4xf32> to vector<4x1xf32>
    %229 = vector.extract_strided_slice %225 {offsets = [0, 0], sizes = [1, 256], strides = [1, 1]} : vector<4x256xf32> to vector<1x256xf32>
    %230 = vector.broadcast %228 : vector<4x1xf32> to vector<4x256xf32>
    %231 = vector.broadcast %229 : vector<1x256xf32> to vector<4x256xf32>
    %232 = arith.mulf %230, %231 : vector<4x256xf32>
    %233 = vector.extract_strided_slice %227 {offsets = [0, 1], sizes = [4, 1], strides = [1, 1]} : vector<4x4xf32> to vector<4x1xf32>
    %234 = vector.extract_strided_slice %225 {offsets = [1, 0], sizes = [1, 256], strides = [1, 1]} : vector<4x256xf32> to vector<1x256xf32>
    %235 = vector.broadcast %233 : vector<4x1xf32> to vector<4x256xf32>
    %236 = vector.broadcast %234 : vector<1x256xf32> to vector<4x256xf32>
    %237 = arith.mulf %235, %236 : vector<4x256xf32>
    %238 = arith.addf %232, %237 : vector<4x256xf32>
    %239 = vector.extract_strided_slice %227 {offsets = [0, 2], sizes = [4, 1], strides = [1, 1]} : vector<4x4xf32> to vector<4x1xf32>
    %240 = vector.extract_strided_slice %225 {offsets = [2, 0], sizes = [1, 256], strides = [1, 1]} : vector<4x256xf32> to vector<1x256xf32>
    %241 = vector.broadcast %239 : vector<4x1xf32> to vector<4x256xf32>
    %242 = vector.broadcast %240 : vector<1x256xf32> to vector<4x256xf32>
    %243 = arith.mulf %241, %242 : vector<4x256xf32>
    %244 = arith.addf %238, %243 : vector<4x256xf32>
    %245 = vector.extract_strided_slice %227 {offsets = [0, 3], sizes = [4, 1], strides = [1, 1]} : vector<4x4xf32> to vector<4x1xf32>
    %246 = vector.extract_strided_slice %225 {offsets = [3, 0], sizes = [1, 256], strides = [1, 1]} : vector<4x256xf32> to vector<1x256xf32>
    %247 = vector.broadcast %245 : vector<4x1xf32> to vector<4x256xf32>
    %248 = vector.broadcast %246 : vector<1x256xf32> to vector<4x256xf32>
    %249 = arith.mulf %247, %248 : vector<4x256xf32>
    %250 = arith.addf %244, %249 : vector<4x256xf32>
    %251 = arith.addf %222, %250 : vector<4x256xf32>
    %c0_44 = arith.constant 0 : index
    %c143 = arith.constant 143 : index
    %252 = vector.load %arg16[%c0_44, %c143] : memref<4x512xf32, #tpu.memory_space<vmem>>, vector<4x256xf32>
    %cst_45 = arith.constant 0.000000e+00 : f32
    %253 = vector.broadcast %cst_45 : f32 to vector<4x256xf32>
    %254 = arith.select %39, %252, %253 : vector<4x256xi1>, vector<4x256xf32>
    %c6 = arith.constant 6 : index
    %c0_46 = arith.constant 0 : index
    %c0_47 = arith.constant 0 : index
    %255 = vector.load %arg6[%c6, %c0_46, %c0_47] : memref<9x4x4xf32, #tpu.memory_space<vmem>>, vector<1x4x4xf32>
    %256 = vector.shape_cast %255 : vector<1x4x4xf32> to vector<4x4xf32>
    %257 = vector.extract_strided_slice %256 {offsets = [0, 0], sizes = [4, 1], strides = [1, 1]} : vector<4x4xf32> to vector<4x1xf32>
    %258 = vector.extract_strided_slice %254 {offsets = [0, 0], sizes = [1, 256], strides = [1, 1]} : vector<4x256xf32> to vector<1x256xf32>
    %259 = vector.broadcast %257 : vector<4x1xf32> to vector<4x256xf32>
    %260 = vector.broadcast %258 : vector<1x256xf32> to vector<4x256xf32>
    %261 = arith.mulf %259, %260 : vector<4x256xf32>
    %262 = vector.extract_strided_slice %256 {offsets = [0, 1], sizes = [4, 1], strides = [1, 1]} : vector<4x4xf32> to vector<4x1xf32>
    %263 = vector.extract_strided_slice %254 {offsets = [1, 0], sizes = [1, 256], strides = [1, 1]} : vector<4x256xf32> to vector<1x256xf32>
    %264 = vector.broadcast %262 : vector<4x1xf32> to vector<4x256xf32>
    %265 = vector.broadcast %263 : vector<1x256xf32> to vector<4x256xf32>
    %266 = arith.mulf %264, %265 : vector<4x256xf32>
    %267 = arith.addf %261, %266 : vector<4x256xf32>
    %268 = vector.extract_strided_slice %256 {offsets = [0, 2], sizes = [4, 1], strides = [1, 1]} : vector<4x4xf32> to vector<4x1xf32>
    %269 = vector.extract_strided_slice %254 {offsets = [2, 0], sizes = [1, 256], strides = [1, 1]} : vector<4x256xf32> to vector<1x256xf32>
    %270 = vector.broadcast %268 : vector<4x1xf32> to vector<4x256xf32>
    %271 = vector.broadcast %269 : vector<1x256xf32> to vector<4x256xf32>
    %272 = arith.mulf %270, %271 : vector<4x256xf32>
    %273 = arith.addf %267, %272 : vector<4x256xf32>
    %274 = vector.extract_strided_slice %256 {offsets = [0, 3], sizes = [4, 1], strides = [1, 1]} : vector<4x4xf32> to vector<4x1xf32>
    %275 = vector.extract_strided_slice %254 {offsets = [3, 0], sizes = [1, 256], strides = [1, 1]} : vector<4x256xf32> to vector<1x256xf32>
    %276 = vector.broadcast %274 : vector<4x1xf32> to vector<4x256xf32>
    %277 = vector.broadcast %275 : vector<1x256xf32> to vector<4x256xf32>
    %278 = arith.mulf %276, %277 : vector<4x256xf32>
    %279 = arith.addf %273, %278 : vector<4x256xf32>
    %280 = arith.addf %251, %279 : vector<4x256xf32>
    %c0_48 = arith.constant 0 : index
    %c144 = arith.constant 144 : index
    %281 = vector.load %arg16[%c0_48, %c144] : memref<4x512xf32, #tpu.memory_space<vmem>>, vector<4x256xf32>
    %c7 = arith.constant 7 : index
    %c0_49 = arith.constant 0 : index
    %c0_50 = arith.constant 0 : index
    %282 = vector.load %arg6[%c7, %c0_49, %c0_50] : memref<9x4x4xf32, #tpu.memory_space<vmem>>, vector<1x4x4xf32>
    %283 = vector.shape_cast %282 : vector<1x4x4xf32> to vector<4x4xf32>
    %284 = vector.extract_strided_slice %283 {offsets = [0, 0], sizes = [4, 1], strides = [1, 1]} : vector<4x4xf32> to vector<4x1xf32>
    %285 = vector.extract_strided_slice %281 {offsets = [0, 0], sizes = [1, 256], strides = [1, 1]} : vector<4x256xf32> to vector<1x256xf32>
    %286 = vector.broadcast %284 : vector<4x1xf32> to vector<4x256xf32>
    %287 = vector.broadcast %285 : vector<1x256xf32> to vector<4x256xf32>
    %288 = arith.mulf %286, %287 : vector<4x256xf32>
    %289 = vector.extract_strided_slice %283 {offsets = [0, 1], sizes = [4, 1], strides = [1, 1]} : vector<4x4xf32> to vector<4x1xf32>
    %290 = vector.extract_strided_slice %281 {offsets = [1, 0], sizes = [1, 256], strides = [1, 1]} : vector<4x256xf32> to vector<1x256xf32>
    %291 = vector.broadcast %289 : vector<4x1xf32> to vector<4x256xf32>
    %292 = vector.broadcast %290 : vector<1x256xf32> to vector<4x256xf32>
    %293 = arith.mulf %291, %292 : vector<4x256xf32>
    %294 = arith.addf %288, %293 : vector<4x256xf32>
    %295 = vector.extract_strided_slice %283 {offsets = [0, 2], sizes = [4, 1], strides = [1, 1]} : vector<4x4xf32> to vector<4x1xf32>
    %296 = vector.extract_strided_slice %281 {offsets = [2, 0], sizes = [1, 256], strides = [1, 1]} : vector<4x256xf32> to vector<1x256xf32>
    %297 = vector.broadcast %295 : vector<4x1xf32> to vector<4x256xf32>
    %298 = vector.broadcast %296 : vector<1x256xf32> to vector<4x256xf32>
    %299 = arith.mulf %297, %298 : vector<4x256xf32>
    %300 = arith.addf %294, %299 : vector<4x256xf32>
    %301 = vector.extract_strided_slice %283 {offsets = [0, 3], sizes = [4, 1], strides = [1, 1]} : vector<4x4xf32> to vector<4x1xf32>
    %302 = vector.extract_strided_slice %281 {offsets = [3, 0], sizes = [1, 256], strides = [1, 1]} : vector<4x256xf32> to vector<1x256xf32>
    %303 = vector.broadcast %301 : vector<4x1xf32> to vector<4x256xf32>
    %304 = vector.broadcast %302 : vector<1x256xf32> to vector<4x256xf32>
    %305 = arith.mulf %303, %304 : vector<4x256xf32>
    %306 = arith.addf %300, %305 : vector<4x256xf32>
    %307 = arith.addf %280, %306 : vector<4x256xf32>
    %c0_51 = arith.constant 0 : index
    %c145 = arith.constant 145 : index
    %308 = vector.load %arg16[%c0_51, %c145] : memref<4x512xf32, #tpu.memory_space<vmem>>, vector<4x256xf32>
    %cst_52 = arith.constant 0.000000e+00 : f32
    %309 = vector.broadcast %cst_52 : f32 to vector<4x256xf32>
    %310 = arith.select %41, %308, %309 : vector<4x256xi1>, vector<4x256xf32>
    %c8 = arith.constant 8 : index
    %c0_53 = arith.constant 0 : index
    %c0_54 = arith.constant 0 : index
    %311 = vector.load %arg6[%c8, %c0_53, %c0_54] : memref<9x4x4xf32, #tpu.memory_space<vmem>>, vector<1x4x4xf32>
    %312 = vector.shape_cast %311 : vector<1x4x4xf32> to vector<4x4xf32>
    %313 = vector.extract_strided_slice %312 {offsets = [0, 0], sizes = [4, 1], strides = [1, 1]} : vector<4x4xf32> to vector<4x1xf32>
    %314 = vector.extract_strided_slice %310 {offsets = [0, 0], sizes = [1, 256], strides = [1, 1]} : vector<4x256xf32> to vector<1x256xf32>
    %315 = vector.broadcast %313 : vector<4x1xf32> to vector<4x256xf32>
    %316 = vector.broadcast %314 : vector<1x256xf32> to vector<4x256xf32>
    %317 = arith.mulf %315, %316 : vector<4x256xf32>
    %318 = vector.extract_strided_slice %312 {offsets = [0, 1], sizes = [4, 1], strides = [1, 1]} : vector<4x4xf32> to vector<4x1xf32>
    %319 = vector.extract_strided_slice %310 {offsets = [1, 0], sizes = [1, 256], strides = [1, 1]} : vector<4x256xf32> to vector<1x256xf32>
    %320 = vector.broadcast %318 : vector<4x1xf32> to vector<4x256xf32>
    %321 = vector.broadcast %319 : vector<1x256xf32> to vector<4x256xf32>
    %322 = arith.mulf %320, %321 : vector<4x256xf32>
    %323 = arith.addf %317, %322 : vector<4x256xf32>
    %324 = vector.extract_strided_slice %312 {offsets = [0, 2], sizes = [4, 1], strides = [1, 1]} : vector<4x4xf32> to vector<4x1xf32>
    %325 = vector.extract_strided_slice %310 {offsets = [2, 0], sizes = [1, 256], strides = [1, 1]} : vector<4x256xf32> to vector<1x256xf32>
    %326 = vector.broadcast %324 : vector<4x1xf32> to vector<4x256xf32>
    %327 = vector.broadcast %325 : vector<1x256xf32> to vector<4x256xf32>
    %328 = arith.mulf %326, %327 : vector<4x256xf32>
    %329 = arith.addf %323, %328 : vector<4x256xf32>
    %330 = vector.extract_strided_slice %312 {offsets = [0, 3], sizes = [4, 1], strides = [1, 1]} : vector<4x4xf32> to vector<4x1xf32>
    %331 = vector.extract_strided_slice %310 {offsets = [3, 0], sizes = [1, 256], strides = [1, 1]} : vector<4x256xf32> to vector<1x256xf32>
    %332 = vector.broadcast %330 : vector<4x1xf32> to vector<4x256xf32>
    %333 = vector.broadcast %331 : vector<1x256xf32> to vector<4x256xf32>
    %334 = arith.mulf %332, %333 : vector<4x256xf32>
    %335 = arith.addf %329, %334 : vector<4x256xf32>
    %336 = arith.addf %307, %335 : vector<4x256xf32>
    %c0_55 = arith.constant 0 : index
    %c0_56 = arith.constant 0 : index
    %c0_57 = arith.constant 0 : index
    %337 = vector.load %arg7[%c0_55, %c0_56, %c0_57] : memref<1x4x1xf32, #tpu.memory_space<vmem>>, vector<1x4x1xf32>
    %338 = vector.shape_cast %337 : vector<1x4x1xf32> to vector<4x1xf32>
    %339 = vector.broadcast %338 : vector<4x1xf32> to vector<4x256xf32>
    %340 = arith.addf %336, %339 : vector<4x256xf32>
    %341 = arith.negf %340 : vector<4x256xf32>
    %342 = math.exp %341 : vector<4x256xf32>
    %cst_58 = arith.constant 1.000000e+00 : f32
    %343 = vector.broadcast %cst_58 : f32 to vector<4x256xf32>
    %344 = arith.addf %343, %342 : vector<4x256xf32>
    %345 = arith.divf %343, %344 : vector<4x256xf32>
    %346 = arith.mulf %340, %345 : vector<4x256xf32>
    %347 = arith.addf %34, %346 : vector<4x256xf32>
    %c0_59 = arith.constant 0 : index
    %c0_60 = arith.constant 0 : index
    %348 = vector.load %arg8[%c0_59, %c0_60] : memref<4x4xf32, #tpu.memory_space<vmem>>, vector<4x4xf32>
    %349 = vector.extract_strided_slice %348 {offsets = [0, 0], sizes = [4, 1], strides = [1, 1]} : vector<4x4xf32> to vector<4x1xf32>
    %350 = vector.extract_strided_slice %347 {offsets = [0, 0], sizes = [1, 256], strides = [1, 1]} : vector<4x256xf32> to vector<1x256xf32>
    %351 = vector.broadcast %349 : vector<4x1xf32> to vector<4x256xf32>
    %352 = vector.broadcast %350 : vector<1x256xf32> to vector<4x256xf32>
    %353 = arith.mulf %351, %352 : vector<4x256xf32>
    %354 = vector.extract_strided_slice %348 {offsets = [0, 1], sizes = [4, 1], strides = [1, 1]} : vector<4x4xf32> to vector<4x1xf32>
    %355 = vector.extract_strided_slice %347 {offsets = [1, 0], sizes = [1, 256], strides = [1, 1]} : vector<4x256xf32> to vector<1x256xf32>
    %356 = vector.broadcast %354 : vector<4x1xf32> to vector<4x256xf32>
    %357 = vector.broadcast %355 : vector<1x256xf32> to vector<4x256xf32>
    %358 = arith.mulf %356, %357 : vector<4x256xf32>
    %359 = arith.addf %353, %358 : vector<4x256xf32>
    %360 = vector.extract_strided_slice %348 {offsets = [0, 2], sizes = [4, 1], strides = [1, 1]} : vector<4x4xf32> to vector<4x1xf32>
    %361 = vector.extract_strided_slice %347 {offsets = [2, 0], sizes = [1, 256], strides = [1, 1]} : vector<4x256xf32> to vector<1x256xf32>
    %362 = vector.broadcast %360 : vector<4x1xf32> to vector<4x256xf32>
    %363 = vector.broadcast %361 : vector<1x256xf32> to vector<4x256xf32>
    %364 = arith.mulf %362, %363 : vector<4x256xf32>
    %365 = arith.addf %359, %364 : vector<4x256xf32>
    %366 = vector.extract_strided_slice %348 {offsets = [0, 3], sizes = [4, 1], strides = [1, 1]} : vector<4x4xf32> to vector<4x1xf32>
    %367 = vector.extract_strided_slice %347 {offsets = [3, 0], sizes = [1, 256], strides = [1, 1]} : vector<4x256xf32> to vector<1x256xf32>
    %368 = vector.broadcast %366 : vector<4x1xf32> to vector<4x256xf32>
    %369 = vector.broadcast %367 : vector<1x256xf32> to vector<4x256xf32>
    %370 = arith.mulf %368, %369 : vector<4x256xf32>
    %371 = arith.addf %365, %370 : vector<4x256xf32>
    %c0_61 = arith.constant 0 : index
    %c0_62 = arith.constant 0 : index
    %372 = vector.load %arg9[%c0_61, %c0_62] : memref<4x1xf32, #tpu.memory_space<vmem>>, vector<4x1xf32>
    %373 = vector.broadcast %372 : vector<4x1xf32> to vector<4x256xf32>
    %374 = arith.addf %371, %373 : vector<4x256xf32>
    %c0_63 = arith.constant 0 : index
    %c0_64 = arith.constant 0 : index
    %375 = vector.load %arg10[%c0_63, %c0_64] : memref<4x4xf32, #tpu.memory_space<vmem>>, vector<4x4xf32>
    %376 = vector.extract_strided_slice %375 {offsets = [0, 0], sizes = [4, 1], strides = [1, 1]} : vector<4x4xf32> to vector<4x1xf32>
    %377 = vector.extract_strided_slice %1 {offsets = [0, 0], sizes = [1, 256], strides = [1, 1]} : vector<4x256xf32> to vector<1x256xf32>
    %378 = vector.broadcast %376 : vector<4x1xf32> to vector<4x256xf32>
    %379 = vector.broadcast %377 : vector<1x256xf32> to vector<4x256xf32>
    %380 = arith.mulf %378, %379 : vector<4x256xf32>
    %381 = vector.extract_strided_slice %375 {offsets = [0, 1], sizes = [4, 1], strides = [1, 1]} : vector<4x4xf32> to vector<4x1xf32>
    %382 = vector.extract_strided_slice %1 {offsets = [1, 0], sizes = [1, 256], strides = [1, 1]} : vector<4x256xf32> to vector<1x256xf32>
    %383 = vector.broadcast %381 : vector<4x1xf32> to vector<4x256xf32>
    %384 = vector.broadcast %382 : vector<1x256xf32> to vector<4x256xf32>
    %385 = arith.mulf %383, %384 : vector<4x256xf32>
    %386 = arith.addf %380, %385 : vector<4x256xf32>
    %387 = vector.extract_strided_slice %375 {offsets = [0, 2], sizes = [4, 1], strides = [1, 1]} : vector<4x4xf32> to vector<4x1xf32>
    %388 = vector.extract_strided_slice %1 {offsets = [2, 0], sizes = [1, 256], strides = [1, 1]} : vector<4x256xf32> to vector<1x256xf32>
    %389 = vector.broadcast %387 : vector<4x1xf32> to vector<4x256xf32>
    %390 = vector.broadcast %388 : vector<1x256xf32> to vector<4x256xf32>
    %391 = arith.mulf %389, %390 : vector<4x256xf32>
    %392 = arith.addf %386, %391 : vector<4x256xf32>
    %393 = vector.extract_strided_slice %375 {offsets = [0, 3], sizes = [4, 1], strides = [1, 1]} : vector<4x4xf32> to vector<4x1xf32>
    %394 = vector.extract_strided_slice %1 {offsets = [3, 0], sizes = [1, 256], strides = [1, 1]} : vector<4x256xf32> to vector<1x256xf32>
    %395 = vector.broadcast %393 : vector<4x1xf32> to vector<4x256xf32>
    %396 = vector.broadcast %394 : vector<1x256xf32> to vector<4x256xf32>
    %397 = arith.mulf %395, %396 : vector<4x256xf32>
    %398 = arith.addf %392, %397 : vector<4x256xf32>
    %c0_65 = arith.constant 0 : index
    %c0_66 = arith.constant 0 : index
    %399 = vector.load %arg11[%c0_65, %c0_66] : memref<4x1xf32, #tpu.memory_space<vmem>>, vector<4x1xf32>
    %400 = vector.broadcast %399 : vector<4x1xf32> to vector<4x256xf32>
    %401 = arith.addf %398, %400 : vector<4x256xf32>
    %cst_67 = arith.constant 0.000000e+00 : f32
    %402 = vector.broadcast %cst_67 : f32 to vector<4x256xf32>
    %403 = arith.cmpf ogt, %374, %402 : vector<4x256xf32>
    %cst_68 = arith.constant 1.000000e-01 : f32
    %404 = vector.broadcast %cst_68 : f32 to vector<4x256xf32>
    %405 = arith.mulf %404, %374 : vector<4x256xf32>
    %406 = arith.select %403, %374, %405 : vector<4x256xi1>, vector<4x256xf32>
    %cst_69 = arith.constant 0.000000e+00 : f32
    %407 = vector.broadcast %cst_69 : f32 to vector<4x256xf32>
    %408 = arith.cmpf ogt, %401, %407 : vector<4x256xf32>
    %cst_70 = arith.constant 1.000000e-01 : f32
    %409 = vector.broadcast %cst_70 : f32 to vector<4x256xf32>
    %410 = arith.mulf %409, %401 : vector<4x256xf32>
    %411 = arith.select %408, %401, %410 : vector<4x256xi1>, vector<4x256xf32>
    %c0_71 = arith.constant 0 : index
    %c0_72 = arith.constant 0 : index
    %412 = vector.load %arg12[%c0_71, %c0_72] : memref<8x4xf32, #tpu.memory_space<vmem>>, vector<8x4xf32>
    %413 = vector.extract_strided_slice %412 {offsets = [0, 0], sizes = [8, 1], strides = [1, 1]} : vector<8x4xf32> to vector<8x1xf32>
    %414 = vector.extract_strided_slice %406 {offsets = [0, 0], sizes = [1, 256], strides = [1, 1]} : vector<4x256xf32> to vector<1x256xf32>
    %415 = vector.broadcast %413 : vector<8x1xf32> to vector<8x256xf32>
    %416 = vector.broadcast %414 : vector<1x256xf32> to vector<8x256xf32>
    %417 = arith.mulf %415, %416 : vector<8x256xf32>
    %418 = vector.extract_strided_slice %412 {offsets = [0, 1], sizes = [8, 1], strides = [1, 1]} : vector<8x4xf32> to vector<8x1xf32>
    %419 = vector.extract_strided_slice %406 {offsets = [1, 0], sizes = [1, 256], strides = [1, 1]} : vector<4x256xf32> to vector<1x256xf32>
    %420 = vector.broadcast %418 : vector<8x1xf32> to vector<8x256xf32>
    %421 = vector.broadcast %419 : vector<1x256xf32> to vector<8x256xf32>
    %422 = arith.mulf %420, %421 : vector<8x256xf32>
    %423 = arith.addf %417, %422 : vector<8x256xf32>
    %424 = vector.extract_strided_slice %412 {offsets = [0, 2], sizes = [8, 1], strides = [1, 1]} : vector<8x4xf32> to vector<8x1xf32>
    %425 = vector.extract_strided_slice %406 {offsets = [2, 0], sizes = [1, 256], strides = [1, 1]} : vector<4x256xf32> to vector<1x256xf32>
    %426 = vector.broadcast %424 : vector<8x1xf32> to vector<8x256xf32>
    %427 = vector.broadcast %425 : vector<1x256xf32> to vector<8x256xf32>
    %428 = arith.mulf %426, %427 : vector<8x256xf32>
    %429 = arith.addf %423, %428 : vector<8x256xf32>
    %430 = vector.extract_strided_slice %412 {offsets = [0, 3], sizes = [8, 1], strides = [1, 1]} : vector<8x4xf32> to vector<8x1xf32>
    %431 = vector.extract_strided_slice %406 {offsets = [3, 0], sizes = [1, 256], strides = [1, 1]} : vector<4x256xf32> to vector<1x256xf32>
    %432 = vector.broadcast %430 : vector<8x1xf32> to vector<8x256xf32>
    %433 = vector.broadcast %431 : vector<1x256xf32> to vector<8x256xf32>
    %434 = arith.mulf %432, %433 : vector<8x256xf32>
    %435 = arith.addf %429, %434 : vector<8x256xf32>
    %c0_73 = arith.constant 0 : index
    %c0_74 = arith.constant 0 : index
    %436 = vector.load %arg13[%c0_73, %c0_74] : memref<8x4xf32, #tpu.memory_space<vmem>>, vector<8x4xf32>
    %437 = vector.extract_strided_slice %436 {offsets = [0, 0], sizes = [8, 1], strides = [1, 1]} : vector<8x4xf32> to vector<8x1xf32>
    %438 = vector.extract_strided_slice %411 {offsets = [0, 0], sizes = [1, 256], strides = [1, 1]} : vector<4x256xf32> to vector<1x256xf32>
    %439 = vector.broadcast %437 : vector<8x1xf32> to vector<8x256xf32>
    %440 = vector.broadcast %438 : vector<1x256xf32> to vector<8x256xf32>
    %441 = arith.mulf %439, %440 : vector<8x256xf32>
    %442 = vector.extract_strided_slice %436 {offsets = [0, 1], sizes = [8, 1], strides = [1, 1]} : vector<8x4xf32> to vector<8x1xf32>
    %443 = vector.extract_strided_slice %411 {offsets = [1, 0], sizes = [1, 256], strides = [1, 1]} : vector<4x256xf32> to vector<1x256xf32>
    %444 = vector.broadcast %442 : vector<8x1xf32> to vector<8x256xf32>
    %445 = vector.broadcast %443 : vector<1x256xf32> to vector<8x256xf32>
    %446 = arith.mulf %444, %445 : vector<8x256xf32>
    %447 = arith.addf %441, %446 : vector<8x256xf32>
    %448 = vector.extract_strided_slice %436 {offsets = [0, 2], sizes = [8, 1], strides = [1, 1]} : vector<8x4xf32> to vector<8x1xf32>
    %449 = vector.extract_strided_slice %411 {offsets = [2, 0], sizes = [1, 256], strides = [1, 1]} : vector<4x256xf32> to vector<1x256xf32>
    %450 = vector.broadcast %448 : vector<8x1xf32> to vector<8x256xf32>
    %451 = vector.broadcast %449 : vector<1x256xf32> to vector<8x256xf32>
    %452 = arith.mulf %450, %451 : vector<8x256xf32>
    %453 = arith.addf %447, %452 : vector<8x256xf32>
    %454 = vector.extract_strided_slice %436 {offsets = [0, 3], sizes = [8, 1], strides = [1, 1]} : vector<8x4xf32> to vector<8x1xf32>
    %455 = vector.extract_strided_slice %411 {offsets = [3, 0], sizes = [1, 256], strides = [1, 1]} : vector<4x256xf32> to vector<1x256xf32>
    %456 = vector.broadcast %454 : vector<8x1xf32> to vector<8x256xf32>
    %457 = vector.broadcast %455 : vector<1x256xf32> to vector<8x256xf32>
    %458 = arith.mulf %456, %457 : vector<8x256xf32>
    %459 = arith.addf %453, %458 : vector<8x256xf32>
    %460 = arith.addf %435, %459 : vector<8x256xf32>
    %c0_75 = arith.constant 0 : index
    %c0_76 = arith.constant 0 : index
    %461 = vector.load %arg14[%c0_75, %c0_76] : memref<8x1xf32, #tpu.memory_space<vmem>>, vector<8x1xf32>
    %462 = vector.broadcast %461 : vector<8x1xf32> to vector<8x256xf32>
    %463 = arith.addf %460, %462 : vector<8x256xf32>
    %464 = arith.negf %463 : vector<8x256xf32>
    %465 = math.exp %464 : vector<8x256xf32>
    %cst_77 = arith.constant 1.000000e+00 : f32
    %466 = vector.broadcast %cst_77 : f32 to vector<8x256xf32>
    %467 = arith.addf %466, %465 : vector<8x256xf32>
    %468 = arith.divf %466, %467 : vector<8x256xf32>
    %469 = arith.mulf %463, %468 : vector<8x256xf32>
    %c0_78 = arith.constant 0 : index
    %c0_79 = arith.constant 0 : index
    %c0_80 = arith.constant 0 : index
    %470 = vector.load %arg15[%c0_78, %c0_79, %c0_80] : memref<1x8x256xf32, #tpu.memory_space<vmem>>, vector<1x8x256xf32>
    %471 = vector.shape_cast %470 : vector<1x8x256xf32> to vector<8x256xf32>
    %472 = vector.shape_cast %469 : vector<8x256xf32> to vector<1x8x256xf32>
    tpu.vector_store %arg15[%c0_78, %c0_79, %c0_80], %472 {strides = array<i32>} : memref<1x8x256xf32, #tpu.memory_space<vmem>>, vector<1x8x256xf32>,
    return
  }
  func.func @transform_0(%arg0: i32) -> (i32, i32, i32) {
    %c0_i32 = arith.constant 0 : i32
    %c0_i32_0 = arith.constant 0 : i32
    %c0_i32_1 = arith.constant 0 : i32
    return %arg0, %c0_i32, %c0_i32_0 : i32, i32, i32
  }
  func.func @transform_1(%arg0: i32) -> (i32, i32) {
    %c0_i32 = arith.constant 0 : i32
    %c0_i32_0 = arith.constant 0 : i32
    %c0_i32_1 = arith.constant 0 : i32
    return %c0_i32, %c0_i32_0 : i32, i32
  }
  func.func @transform_2(%arg0: i32) -> (i32, i32) {
    %c0_i32 = arith.constant 0 : i32
    %c0_i32_0 = arith.constant 0 : i32
    %c0_i32_1 = arith.constant 0 : i32
    return %c0_i32, %c0_i32_0 : i32, i32
  }
  func.func @transform_3(%arg0: i32) -> (i32, i32, i32) {
    %c0_i32 = arith.constant 0 : i32
    %c0_i32_0 = arith.constant 0 : i32
    %c0_i32_1 = arith.constant 0 : i32
    %c0_i32_2 = arith.constant 0 : i32
    return %c0_i32, %c0_i32_0, %c0_i32_1 : i32, i32, i32
  }
  func.func @transform_4(%arg0: i32) -> (i32, i32, i32) {
    %c0_i32 = arith.constant 0 : i32
    %c0_i32_0 = arith.constant 0 : i32
    %c0_i32_1 = arith.constant 0 : i32
    %c0_i32_2 = arith.constant 0 : i32
    return %c0_i32, %c0_i32_0, %c0_i32_1 : i32, i32, i32
  }
  func.func @transform_5(%arg0: i32) -> (i32, i32, i32) {
    %c0_i32 = arith.constant 0 : i32
    %c0_i32_0 = arith.constant 0 : i32
    %c0_i32_1 = arith.constant 0 : i32
    %c0_i32_2 = arith.constant 0 : i32
    return %c0_i32, %c0_i32_0, %c0_i32_1 : i32, i32, i32
  }
  func.func @transform_6(%arg0: i32) -> (i32, i32, i32) {
    %c0_i32 = arith.constant 0 : i32
    %c0_i32_0 = arith.constant 0 : i32
    %c0_i32_1 = arith.constant 0 : i32
    %c0_i32_2 = arith.constant 0 : i32
    return %c0_i32, %c0_i32_0, %c0_i32_1 : i32, i32, i32
  }
  func.func @transform_7(%arg0: i32) -> (i32, i32) {
    %c0_i32 = arith.constant 0 : i32
    %c0_i32_0 = arith.constant 0 : i32
    %c0_i32_1 = arith.constant 0 : i32
    return %c0_i32, %c0_i32_0 : i32, i32
  }
  func.func @transform_8(%arg0: i32) -> (i32, i32) {
    %c0_i32 = arith.constant 0 : i32
    %c0_i32_0 = arith.constant 0 : i32
    %c0_i32_1 = arith.constant 0 : i32
    return %c0_i32, %c0_i32_0 : i32, i32
  }
  func.func @transform_9(%arg0: i32) -> (i32, i32) {
    %c0_i32 = arith.constant 0 : i32
    %c0_i32_0 = arith.constant 0 : i32
    %c0_i32_1 = arith.constant 0 : i32
    return %c0_i32, %c0_i32_0 : i32, i32
  }
  func.func @transform_10(%arg0: i32) -> (i32, i32) {
    %c0_i32 = arith.constant 0 : i32
    %c0_i32_0 = arith.constant 0 : i32
    %c0_i32_1 = arith.constant 0 : i32
    return %c0_i32, %c0_i32_0 : i32, i32
  }
  func.func @transform_11(%arg0: i32) -> (i32, i32) {
    %c0_i32 = arith.constant 0 : i32
    %c0_i32_0 = arith.constant 0 : i32
    %c0_i32_1 = arith.constant 0 : i32
    return %c0_i32, %c0_i32_0 : i32, i32
  }
  func.func @transform_12(%arg0: i32) -> (i32, i32) {
    %c0_i32 = arith.constant 0 : i32
    %c0_i32_0 = arith.constant 0 : i32
    %c0_i32_1 = arith.constant 0 : i32
    return %c0_i32, %c0_i32_0 : i32, i32
  }
  func.func @transform_13(%arg0: i32) -> (i32, i32) {
    %c0_i32 = arith.constant 0 : i32
    %c0_i32_0 = arith.constant 0 : i32
    %c0_i32_1 = arith.constant 0 : i32
    return %c0_i32, %c0_i32_0 : i32, i32
  }
  func.func @transform_14(%arg0: i32) -> (i32, i32, i32) {
    %c0_i32 = arith.constant 0 : i32
    %c0_i32_0 = arith.constant 0 : i32
    %c0_i32_1 = arith.constant 0 : i32
    return %arg0, %c0_i32, %c0_i32_0 : i32, i32, i32
  }
}

</mosaic_0001>

<bundles_post_ra>
// kernel: bottleneck_csp_forward.1
= control target key start
LH: loop header
LB: loop body
LE: loop exit
PB: predicated region body
PF: predicated region fallthrough
CT: control target
= control target key end

     0   :  { %s2234_s29 = smov 0   ;;  %s2932_s0 = inlined_call_operand.vmem [shape: f32[2,4,256], index: 0, kind: input, shape index: {}]   ;;  %s2933_s1 = inlined_call_operand.vmem [shape: f32[4,4], index: 1, kind: input, shape index: {}]   ;;  %s2934_s2 = inlined_call_operand.vmem [shape: f32[4,1], index: 2, kind: input, shape index: {}]   ;;  %s2935_s3 = inlined_call_operand.vmem [shape: f32[1,4,4], index: 3, kind: input, shape index: {}]   ;;  %s2936_s4 = inlined_call_operand.vmem [shape: f32[1,4,1], index: 4, kind: input, shape index: {}]   ;;  %s2937_s5 = inlined_call_operand.vmem [shape: f32[9,4,4], index: 5, kind: input, shape index: {}]   ;;  %s2938_s6 = inlined_call_operand.vmem [shape: f32[1,4,1], index: 6, kind: input, shape index: {}]   ;;  %s2939_s7 = inlined_call_operand.vmem [shape: f32[4,4], index: 7, kind: input, shape index: {}]   ;;  %s2940_s8 = inlined_call_operand.vmem [shape: f32[4,1], index: 8, kind: input, shape index: {}]   ;;  %s2941_s9 = inlined_call_operand.vmem [shape: f32[4,4], index: 9, kind: input, shape index: {}]   ;;  %s2942_s10 = inlined_call_operand.vmem [shape: f32[4,1], index: 10, kind: input, shape index: {}]   ;;  %s2943_s11 = inlined_call_operand.vmem [shape: f32[8,4], index: 11, kind: input, shape index: {}]   ;;  %s2944_s12 = inlined_call_operand.vmem [shape: f32[8,4], index: 12, kind: input, shape index: {}]   ;;  %s2945_s13 = inlined_call_operand.vmem [shape: f32[8,1], index: 13, kind: input, shape index: {}]   ;;  %s2946_s14 = inlined_call_operand.vmem [shape: f32[2,8,256], index: 14, kind: output, shape index: {}]  }
   0x1 LB: > { %s2001_s30 = sadd.s32 4294967295, %s2144_s29   ;;  %p2005_p0 = scmp.ge.s32.totalorder %s2144_s29, 1  ;;  %s2144_s29 = sphi %s2234_s29, %s24_s29  }
   0x2   : > { %p412_p1 = scmp.lt.s32.totalorder %s2144_s29, 3 }
   0x4   : > { %p413_p2 = pnand %p2005_p0, %p412_p1 }
   0x6   : > { %416 = sbr.rel (%p413_p2) target bundleno = 516 (0x204), region = 76 }
   0xd   : > { %v469_v0 = vld [vmem:[%s2933_s1] sm:$0xf]  ;;  %v2950_v1 = vmov 0   ;;  %v2954_v2 = vmov 2   ;;  %v2148_v3 = vmov 0.0   ;;  %v2948_v4 = vmov 1  }
   0xe   : > { %2051 = vset.pattern.permute.xlu0 %v2950_v1  ;;  %2053 = vset.pattern.permute.xlu1 %v2954_v2  ;;  %605 = vst [vmem:[#allocation2] sm:$0xf] %v2148_v3  ;;  %606 = vst [vmem:[#allocation2 + $0xc] sm:$0xf] %v2148_v3  ;;  %v2952_v5 = vmov 3   ;;  %s2151_s23 = smov 127   ;;  %v2947_v20 = vlaneseq }
   0xf   : > { %472 = vperm.xlu0 %2051, %v469_v0   ;;  %523 = vperm.xlu1 %2053, %v469_v0   ;;  %v574_v6 = vld [vmem:[%s2934_s2] sm:$0xf]  ;;  %v2014_v8 = vld [vmem:[%s2937_s5 + $0x4] sm:$0xf]  ;;  %v2020_v11 = vld [vmem:[%s2937_s5 + $0x1c] sm:$0xf] }
  0x10   : > { %v607_v7 = vld [vmem:[%s2935_s3] sm:$0xf]  ;;  %v2017_v12 = vld [vmem:[%s2937_s5 + $0x10] sm:$0xf]  ;;  %v2015_v13 = vld [vmem:[%s2937_s5 + $0x8] sm:$0xf] }
  0x11   : > { %v671_v9 = vld [vmem:[%s2936_s4] sm:$0xf]  ;;  %v2016_v14 = vld [vmem:[%s2937_s5 + $0xc] sm:$0xf]  ;;  %v2019_v15 = vld [vmem:[%s2937_s5 + $0x18] sm:$0xf] }
  0x12   : > { %v716_v10 = vld [vmem:[%s2937_s5] sm:$0xf]  ;;  %s2152_s24 = smov 113   ;;  %v2018_v19 = vld [vmem:[%s2937_s5 + $0x14] sm:$0xf]  ;;  %p458_p3 = scmp.lt.s32.totalorder %s2001_s30, 1 }
  0x13   : > { %2052 = vset.pattern.permute.xlu0 %v2948_v4  ;;  %2054 = vset.pattern.permute.xlu1 %v2952_v5  ;;  %v2307_v18 = vld [vmem:[%s2937_s5 + $0x20] sm:$0xf]  ;;  %v477_v21 = vshrl.u32 %v2947_v20, 7  ;;  %s2153_s19 = smov 15   ;;  %s2154_s20 = smov 17   ;;  %vm709_vm0 = vcmask 138240  }
  0x14   : > { %497 = vperm.xlu0 %2052, %v469_v0   ;;  %549 = vperm.xlu1 %2054, %v469_v0   ;;  %s2998_s30 = smov (!%p458_p3, %s2001_s30), 1  ;;  %s2155_s21 = smov 1   ;;  %vm957_vm3 = vcmask 121856   ;;  %vm1042_vm6 = vcmask 7168   ;;  %vm1236_vm7 = vcmask 1039360   ;;  %vm1321_vm8 = vcmask 924672  }
  0x15   : > { %v1226_v16 = vld [vmem:[#allocation2 + $0xc] sm:$0xf]  ;;  %s2028_s15 = sshll.u32 %s2998_s30, 3  ;;  %v2332_v22 = vsub.s32 0, %v477_v21  ;;  %v2334_v23 = vsub.s32 4, %v477_v21  ;;  %v2336_v24 = vsub.s32 1, %v477_v21 }
  0x16   : > { %v1311_v17 = vld [vmem:[#allocation2 + $0xc] sm:$0xf]  ;;  %s462_s18 = scalar_lea.vmem %s2932_s0, %s2028_s15  ;;  %v2338_v25 = vsub.s32 5, %v477_v21  ;;  %v2340_v26 = vsub.s32 2, %v477_v21  ;;  %v2342_v28 = vsub.s32 6, %v477_v21  ;;  %v2344_v29 = vsub.s32 3, %v477_v21 }
  0x17   : > { %v468_v27 = vld [vmem:[%s462_s18] sm:$0xff]  ;;  %v2346_v30 = vsub.s32 7, %v477_v21  ;;  %s2156_s22 = smov 111   ;;  %s2157_s25 = smov 16   ;;  %vm1570_vm9 = vcmask 908288   ;;  %vm943_vm10 = vcmask 130048  }
  0x18   : > { %2055 = vset.pattern.permute.xlu1 %v2950_v1  ;;  %2056 = vset.pattern.permute.xlu0 %v2950_v1  ;;  %v479_v31 = vrot.slane %v468_v27, %v2332_v22  ;;  %v483_v32 = vrot.slane %v468_v27, %v2334_v23  ;;  %v503_v33 = vrot.slane %v468_v27, %v2336_v24  ;;  %s2158_s28 = smov 112   ;;  %vm1556_vm11 = vcmask 916480  }
  0x19   : > { %577 = vperm.xlu1 %2055, %v574_v6   ;;  %610 = vperm.xlu0 %2056, %v607_v7   ;;  %v507_v34 = vrot.slane %v468_v27, %v2338_v25  ;;  %v529_v35 = vrot.slane %v468_v27, %v2340_v26  ;;  %v533_v36 = vrot.slane %v468_v27, %v2342_v28 }
  0x1a   : > { %v555_v39 = vrot.slane %v468_v27, %v2344_v29  ;;  %v559_v40 = vrot.slane %v468_v27, %v2346_v30  ;;  %v2358_v41 = vrot.slane %v479_v31, %v2332_v22  ;;  %v2361_v42 = vrot.slane %v483_v32, %v2332_v22 }
  0x1b   : > { %v2364_v43 = vrot.slane %v503_v33, %v2336_v24  ;;  %v2367_v44 = vrot.slane %v507_v34, %v2336_v24  ;;  %v2371_v45 = vrot.slane %v529_v35, %v2340_v26  ;;  %v2374_v46 = vrot.slane %v533_v36, %v2340_v26 }
  0x1c   : > { %2965 = vst [vmem:[#allocation3_spill] sm:$0xff] %v2358_v41  ;;  %2966 = vst [vmem:[#allocation4_spill] sm:$0xff] %v2361_v42  ;;  %v2377_v47 = vrot.slane %v555_v39, %v2344_v29  ;;  %v2380_v48 = vrot.slane %v559_v40, %v2344_v29 }
  0x1d   : > { %2057 = vset.pattern.permute.xlu1 %v2948_v4  ;;  %2059 = vset.pattern.permute.xlu0 %v2952_v5  ;;  %2967 = vst [vmem:[#allocation5_spill] sm:$0xff] %v2367_v44  ;;  %2968 = vst [vmem:[#allocation6_spill] sm:$0xff] %v2371_v45 }
  0x1e   : > { %624 = vperm.xlu1 %2057, %v607_v7   ;;  %656 = vperm.xlu0 %2059, %v607_v7   ;;  %2969 = vst [vmem:[#allocation7_spill] sm:$0xff] %v2374_v46  ;;  %2970 = vst [vmem:[#allocation8_spill] sm:$0xff] %v2377_v47 }
  0x1f   : > { %2971 = vst [vmem:[#allocation9_spill] sm:$0xff] %v2380_v48 }
  0x22   : > { %2058 = vset.pattern.permute.xlu1 %v2954_v2  ;;  %2065 = vset.pattern.permute.xlu0 %v2954_v2 }
  0x23   : > { %640 = vperm.xlu1 %2058, %v607_v7   ;;  %861 = vperm.xlu0 %2065, %v2014_v8  }
  0x27   : > { %2060 = vset.pattern.permute.xlu1 %v2950_v1  ;;  %2066 = vset.pattern.permute.xlu0 %v2950_v1 }
  0x28   : > { %674 = vperm.xlu1 %2060, %v671_v9   ;;  %719 = vperm.xlu0 %2066, %v716_v10  }
  0x2c   : > { %2061 = vset.pattern.permute.xlu1 %v2948_v4  ;;  %1401 = vperm.xlu0 %2066, %v2020_v11  }
  0x2d   : > { %733 = vperm.xlu1 %2061, %v716_v10  }
  0x30   : > { %2068 = vset.pattern.permute.xlu0 %v2952_v5 }
  0x31   : > { %2062 = vset.pattern.permute.xlu1 %v2954_v2  ;;  %765 = vperm.xlu0 %2068, %v716_v10  }
  0x32   : > { %749 = vperm.xlu1 %2062, %v716_v10  }
  0x35   : > { %1511 = vperm.xlu0 %2068, %v2020_v11  }
  0x36   : > { %2063 = vset.pattern.permute.xlu1 %v2950_v1 }
  0x37   : > { %788 = vperm.xlu1 %2063, %v2014_v8  }
  0x39   : > { %1198 = vperm.xlu0 %2068, %v2017_v12  }
  0x3b   : > { %2064 = vset.pattern.permute.xlu1 %v2948_v4 }
  0x3c   : > { %824 = vperm.xlu1 %2064, %v2014_v8  }
  0x3d   : > { %2080 = vset.pattern.permute.xlu0 %v2948_v4 }
  0x3e   : > { %982 = vperm.xlu0 %2080, %v2015_v13  }
  0x40   : > { %2067 = vset.pattern.permute.xlu1 %v2952_v5 }
  0x41   : > { %898 = vperm.xlu1 %2067, %v2014_v8  }
  0x42   : > { %1067 = vperm.xlu0 %2080, %v2016_v14  }
  0x45   : > { %2069 = vset.pattern.permute.xlu1 %v2948_v4 }
  0x46   : > { %1437 = vperm.xlu1 %2069, %v2020_v11   ;;  %1346 = vperm.xlu0 %2080, %v2019_v15  }
  0x4a   : > { %2070 = vset.pattern.permute.xlu1 %v2954_v2  ;;  %2083 = vset.pattern.permute.xlu0 %v2954_v2 }
  0x4b   : > { %1474 = vperm.xlu1 %2070, %v2020_v11   ;;  %1172 = vperm.xlu0 %2083, %v2017_v12  }
  0x4f   : > { %2071 = vset.pattern.permute.xlu1 %v2950_v1  ;;  %1234 = vrot.lane.b32.xlu0 %v1226_v16, %s2151_s23 }
  0x50   : > { %968 = vperm.xlu1 %2071, %v2015_v13  }
  0x53   : > { %1362 = vperm.xlu0 %2083, %v2019_v15  }
  0x54   : > { %2072 = vset.pattern.permute.xlu1 %v2954_v2 }
  0x55   : > { %998 = vperm.xlu1 %2072, %v2015_v13  }
  0x57   : > { %2085 = vset.pattern.permute.xlu0 %v2950_v1 }
  0x58   : > { %1121 = vperm.xlu0 %2085, %v2017_v12  }
  0x59   : > { %2073 = vset.pattern.permute.xlu1 %v2952_v5 }
  0x5a   : > { %1014 = vperm.xlu1 %2073, %v2015_v13  }
  0x5c   : > { %1319 = vrot.lane.b32.xlu0 %v1311_v17, %s2152_s24 }
  0x5e   : > { %2074 = vset.pattern.permute.xlu1 %v2950_v1 }
  0x5f   : > { %1053 = vperm.xlu1 %2074, %v2016_v14  }
  0x60   : > { %1581 = vperm.xlu0 %2085, %v2307_v18  }
  0x63   : > { %2075 = vset.pattern.permute.xlu1 %v2954_v2 }
  0x64   : > { %1083 = vperm.xlu1 %2075, %v2016_v14  }
  0x68   : > { %2076 = vset.pattern.permute.xlu1 %v2948_v4 }
  0x69   : > { %1146 = vperm.xlu1 %2076, %v2017_v12  }
  0x6d   : > { %2077 = vset.pattern.permute.xlu1 %v2952_v5 }
  0x6e   : > { %1099 = vperm.xlu1 %2077, %v2016_v14  }
  0x72   : > { %2078 = vset.pattern.permute.xlu1 %v2950_v1 }
  0x73   : > { %1247 = vperm.xlu1 %2078, %v2018_v19  }
  0x77   : > { %2079 = vset.pattern.permute.xlu1 %v2948_v4 }
  0x78   : > { %1261 = vperm.xlu1 %2079, %v2018_v19  }
  0x7c   : > { %2081 = vset.pattern.permute.xlu1 %v2954_v2 }
  0x7d   : > { %1277 = vperm.xlu1 %2081, %v2018_v19  }
  0x81   : > { %2082 = vset.pattern.permute.xlu1 %v2950_v1 }
  0x82   : > { %1332 = vperm.xlu1 %2082, %v2019_v15  }
  0x86   : > { %2084 = vset.pattern.permute.xlu1 %v2952_v5 }
  0x87   : > { %1293 = vperm.xlu1 %2084, %v2018_v19  }
  0x8b   : > { %1378 = vperm.xlu1 %2084, %v2019_v15  }
  0x8e   : > { %v473_v37 = vpop.permute.xlu0 %472  ;;  %v524_v38 = vpop.permute.xlu1 %523 }
  0x8f   : > { %2086 = vset.pattern.permute.xlu1 %v2948_v4  ;;  %v494_v51 = vmul.f32 %v2358_v41, %v473_v37  ;;  %v495_v52 = vmul.f32 %v2361_v42, %v473_v37  ;;  %v544_v55 = vmul.f32 %v2371_v45, %v524_v38  ;;  %v545_v56 = vmul.f32 %v2374_v46, %v524_v38 }
  0x90   : > { %1595 = vperm.xlu1 %2086, %v2307_v18  }
  0x93   : > { %v498_v49 = vpop.permute.xlu0 %497  ;;  %v550_v50 = vpop.permute.xlu1 %549 }
  0x94   : > { %v518_v53 = vmul.f32 %v2364_v43, %v498_v49  ;;  %v519_v54 = vmul.f32 %v2367_v44, %v498_v49  ;;  %2087 = vset.pattern.permute.xlu1 %v2954_v2  ;;  %v570_v59 = vmul.f32 %v2377_v47, %v550_v50  ;;  %v571_v60 = vmul.f32 %v2380_v48, %v550_v50 }
  0x95   : > { %1611 = vperm.xlu1 %2087, %v2307_v18  }
  0x96   : > { %v520_v57 = vadd.f32 %v518_v53, %v494_v51  ;;  %v521_v58 = vadd.f32 %v519_v54, %v495_v52 }
  0x98   : > { %v546_v61 = vadd.f32 %v544_v55, %v520_v57  ;;  %v547_v62 = vadd.f32 %v545_v56, %v521_v58  ;;  %v578_v63 = vpop.permute.xlu1 %577  ;;  %v611_v11 = vpop.permute.xlu0 %610 }
  0x99   : > { %2088 = vset.pattern.permute.xlu1 %v2952_v5 }
  0x9a   : > { %v572_v0 = vadd.f32 %v570_v59, %v546_v61  ;;  %v573_v3 = vadd.f32 %v571_v60, %v547_v62 }
  0x9c   : > { %v580_v6 = vadd.f32 %v578_v63, %v572_v0  ;;  %v581_v7 = vadd.f32 %v578_v63, %v573_v3 }
  0x9d   : > { %v625_v8 = vpop.permute.xlu1 %624  ;;  %v657_v13 = vpop.permute.xlu0 %656 }
  0x9e   : > { %v2010_v9 = vmul.f32 -1.442695, %v580_v6  ;;  %v2011_v10 = vmul.f32 -1.442695, %v581_v7 }
  0xa0   : > { %2105 = vpow2.f32 %v2010_v9 }
  0xa1   : > { %2107 = vpow2.f32 %v2011_v10 }
  0xa2   : > { %v641_v12 = vpop.permute.xlu1 %640  ;;  %v2393_v19 = vpop.permute.xlu0 %861 }
  0xa7   : > { %v675_v14 = vpop.permute.xlu1 %674  ;;  %v2399_v32 = vpop.permute.xlu0 %719 }
  0xaa   : > { %v2106_v15 = vpop.eup %2105 }
  0xab   : > { %v2108_v16 = vpop.eup %2107  ;;  %v588_v17 = vadd.f32 1.0, %v2106_v15  ;;  %v2403_v35 = vpop.permute.xlu0 %1401 }
  0xac   : > { %v589_v21 = vadd.f32 1.0, %v2108_v16  ;;  %v2395_v27 = vpop.permute.xlu1 %733 }
  0xad   : > { %2109 = vrcp.f32 %v588_v17 }
  0xae   : > { %2111 = vrcp.f32 %v589_v21 }
  0xb0   : > { %v2427_v60 = vpop.permute.xlu0 %765 }
  0xb1   : > { %v2397_v31 = vpop.permute.xlu1 %749 }
  0xb4   : > { %v2431_v17 = vpop.permute.xlu0 %1511 }
  0xb6   : > { %v2401_v33 = vpop.permute.xlu1 %788 }
  0xb7   : > { %v2110_v34 = vpop.eup %2109 }
  0xb8   : > { %v2112_v36 = vpop.eup %2111  ;;  %v2405_v37 = vmul.f32 %v2110_v34, %v580_v6 }
  0xb9   : > { %v2407_v38 = vmul.f32 %v2112_v36, %v581_v7 }
  0xba   : > { %2972 = vst [vmem:[#allocation10_spill] sm:$0xff] %v2405_v37  ;;  %v630_v39 = vrot.slane %v2405_v37, %v2336_v24  ;;  %v646_v40 = vrot.slane %v2405_v37, %v2340_v26  ;;  %v616_v49 = vrot.slane %v2405_v37, %v2332_v22  ;;  %v662_v56 = vrot.slane %v2405_v37, %v2344_v29 }
  0xbb   : > { %2973 = vst [vmem:[#allocation11_spill] sm:$0xff] %v2407_v38  ;;  %v634_v50 = vrot.slane %v2407_v38, %v2336_v24  ;;  %v650_v51 = vrot.slane %v2407_v38, %v2340_v26  ;;  %v620_v52 = vrot.slane %v2407_v38, %v2332_v22  ;;  %v2421_v53 = vpop.permute.xlu1 %824  ;;  %v666_v59 = vrot.slane %v2407_v38, %v2344_v29 }
  0xbc   : > { %v635_v54 = vmul.f32 %v630_v39, %v625_v8  ;;  %v621_v55 = vmul.f32 %v616_v49, %v611_v11  ;;  %v651_v61 = vmul.f32 %v646_v40, %v641_v12  ;;  %v667_v6 = vmul.f32 %v662_v56, %v657_v13 }
  0xbd   : > { %v636_v57 = vmul.f32 %v634_v50, %v625_v8  ;;  %v622_v58 = vmul.f32 %v620_v52, %v611_v11  ;;  %v652_v63 = vmul.f32 %v650_v51, %v641_v12  ;;  %v668_v10 = vmul.f32 %v666_v59, %v657_v13  ;;  %v1199_v12 = vpop.permute.xlu0 %1198 }
  0xbe   : > { %v637_v62 = vadd.f32 %v635_v54, %v621_v55 }
  0xbf   : > { %v638_v0 = vadd.f32 %v636_v57, %v622_v58 }
  0xc0   : > { %v653_v3 = vadd.f32 %v651_v61, %v637_v62  ;;  %v2429_v7 = vpop.permute.xlu1 %898 }
  0xc1   : > { %v654_v9 = vadd.f32 %v652_v63, %v638_v0  ;;  %v2437_v40 = vpop.permute.xlu0 %982 }
  0xc2   : > { %v669_v15 = vadd.f32 %v667_v6, %v653_v3 }
  0xc3   : > { %v670_v16 = vadd.f32 %v668_v10, %v654_v9 }
  0xc4   : > { %v677_v8 = vadd.f32 %v675_v14, %v669_v15 }
  0xc5   : > { %v678_v11 = vadd.f32 %v675_v14, %v670_v16  ;;  %v2433_v21 = vpop.permute.xlu1 %1437  ;;  %v2443_v14 = vpop.permute.xlu0 %1067 }
  0xc6   : > { %v2012_v34 = vmul.f32 -1.442695, %v677_v8 }
  0xc7   : > { %v2013_v36 = vmul.f32 -1.442695, %v678_v11 }
  0xc8   : > { %2113 = vpow2.f32 %v2012_v34 }
  0xc9   : > { %2115 = vpow2.f32 %v2013_v36  ;;  %v2447_v56 = vpop.permute.xlu0 %1346 }
  0xca   : > { %v2435_v39 = vpop.permute.xlu1 %1474 }
  0xcd   : > { %v1173_v63 = vpop.permute.xlu0 %1172 }
  0xcf   : > { %v2439_v49 = vpop.permute.xlu1 %968 }
  0xd2   : > { %v2114_v13 = vpop.eup %2113 }
  0xd3   : > { %v2116_v50 = vpop.eup %2115  ;;  %v685_v51 = vadd.f32 1.0, %v2114_v13 }
  0xd4   : > { %v686_v52 = vadd.f32 1.0, %v2116_v50  ;;  %v2441_v54 = vpop.permute.xlu1 %998 }
  0xd5   : > { %2117 = vrcp.f32 %v685_v51 }
  0xd6   : > { %2119 = vrcp.f32 %v686_v52 }
  0xd9   : > { %v2445_v55 = vpop.permute.xlu1 %1014 }
  0xde   : > { %v2449_v57 = vpop.permute.xlu1 %1053 }
  0xdf   : > { %v2118_v58 = vpop.eup %2117 }
  0xe0   : > { %v2120_v59 = vpop.eup %2119  ;;  %v691_v61 = vmul.f32 %v2118_v58, %v677_v8 }
  0xe1   : > { %v2451_v62 = vmul.f32 %v2120_v59, %v678_v11  ;;  %v2473_v11 = vpop.permute.xlu0 %1234 }
  0xe3   : > { %v2454_v0 = vcombine.low %v691_v61, %v2451_v62  ;;  %v2456_v3 = vpop.permute.xlu1 %1083 }
  0xe5   : > { %697 = vst [vmem:[#allocation2 + $0x4] sm:$0xff] %v2454_v0  ;;  %v1517_v6 = vrot.slane %v2454_v0, %v2344_v29  ;;  %v1521_v9 = vrot.slane %v2454_v0, %v2346_v30  ;;  %v1443_v10 = vrot.slane %v2454_v0, %v2336_v24  ;;  %v1447_v15 = vrot.slane %v2454_v0, %v2338_v25  ;;  %v2484_v61 = vpop.permute.xlu0 %1362 }
  0xe7   : > { %v2468_v16 = vrot.slane %v1517_v6, %v2344_v29  ;;  %v2471_v8 = vrot.slane %v1521_v9, %v2344_v29  ;;  %v2476_v34 = vrot.slane %v1443_v10, %v2336_v24  ;;  %v1462_v36 = vrot.slane %v1447_v15, %v2336_v24 }
  0xe8   : > { %v1147_v13 = vpop.permute.xlu1 %1146  ;;  %v1409_v6 = vrot.slane %v2454_v0, %v2332_v22  ;;  %v1413_v9 = vrot.slane %v2454_v0, %v2334_v23  ;;  %v1480_v15 = vrot.slane %v2454_v0, %v2340_v26 }
  0xe9   : > { %v1219_v50 = vmul.f32 %v2468_v16, %v1199_v12  ;;  %v1220_v51 = vmul.f32 %v2471_v8, %v1199_v12  ;;  %v1167_v58 = vmul.f32 %v2476_v34, %v1147_v13  ;;  %v1168_v59 = vmul.f32 %v1462_v36, %v1147_v13  ;;  %v1122_v5 = vpop.permute.xlu0 %1121 }
  0xea   : > { %v1484_v13 = vrot.slane %v2454_v0, %v2342_v28  ;;  %v2505_v4 = vrot.slane %v1409_v6, %v2332_v22  ;;  %v2512_v2 = vrot.slane %v1480_v15, %v2340_v26 }
  0xec   : > { %v2481_v52 = vld [vmem:[#allocation2] sm:$0xff]  ;;  %v699_v20 = vld [vmem:[#allocation2 + $0x8] sm:$0xf]  ;;  %v1499_v6 = vrot.slane %v1484_v13, %v2340_v26  ;;  %v1193_v47 = vmul.f32 %v2512_v2, %v1173_v63 }
  0xed   : > { %951 = vrot.lane.b32.xlu0 %v2481_v52, %s2153_s19  ;;  %703 = vrot.lane.b32.xlu1 %v2481_v52, %s2154_s20  ;;  %v800_v12 = vrot.slane %v2481_v52, %v2334_v23  ;;  %v834_v10 = vrot.slane %v2481_v52, %v2338_v25  ;;  %v1428_v25 = vrot.slane %v1413_v9, %v2332_v22  ;;  %v1032_v38 = vld [vmem:[#allocation2 + $0x8] sm:$0xf] }
  0xee   : > { %v2514_v37 = vld [vmem:[#allocation2 + $0x8] sm:$0xf]  ;;  %v871_v48 = vrot.slane %v2481_v52, %v2342_v28  ;;  %v1194_v46 = vmul.f32 %v1499_v6, %v1173_v63  ;;  %v830_v63 = vrot.slane %v2481_v52, %v2336_v24 }
  0xef   : > { %v815_v23 = vrot.slane %v800_v12, %v2332_v22  ;;  %v849_v1 = vrot.slane %v834_v10, %v2336_v24  ;;  %v702_v10 = vcombine.high %v2481_v52, %v2481_v52  ;;  %v1144_v15 = vmul.f32 %v1428_v25, %v1122_v5 }
  0xf0   : > { %v886_v13 = vrot.slane %v871_v48, %v2340_v26 }
  0xf1   : > { %1036 = vrot.lane.b32.xlu0 %v2481_v52, %s2155_s21  ;;  %707 = vrot.lane.b32.xlu1 %v699_v20, %s2154_s20  ;;  %v1143_v20 = vmul.f32 %v2505_v4, %v1122_v5  ;;  %v821_v12 = vmul.f32 %v815_v23, %v2401_v33  ;;  %v855_v9 = vmul.f32 %v849_v1, %v2421_v53 }
  0xf2   : > { %v1170_v45 = vadd.f32 %v1168_v59, %v1144_v15  ;;  %v892_v5 = vmul.f32 %v886_v13, %v2393_v19  ;;  %v1644_v15 = vld [vmem:[%s2938_s6] sm:$0xf] }
  0xf3   : > { %v1169_v28 = vadd.f32 %v1167_v58, %v1143_v20  ;;  %v858_v1 = vadd.f32 %v855_v9, %v821_v12  ;;  %v845_v20 = vrot.slane %v830_v63, %v2336_v24  ;;  %v1505_v12 = vmul.f32 %v1499_v6, %v2435_v39 }
  0xf4   : > { %v1196_v23 = vadd.f32 %v1194_v46, %v1170_v45  ;;  %v796_v46 = vrot.slane %v2481_v52, %v2332_v22  ;;  %v867_v9 = vrot.slane %v2481_v52, %v2340_v26 }
  0xf5   : > { %1040 = vrot.lane.b32.xlu0 %v1032_v38, %s2155_s21  ;;  %955 = vrot.lane.b32.xlu1 %v2514_v37, %s2153_s19  ;;  %v908_v38 = vrot.slane %v2481_v52, %v2346_v30  ;;  %v1195_v42 = vadd.f32 %v1193_v47, %v1169_v28  ;;  %v2542_v30 = vld [vmem:[#allocation2 + $0xc] sm:$0xf]  ;;  %v1434_v47 = vmul.f32 %v1428_v25, %v2403_v35 }
  0xf6   : > { %v2538_v48 = vadd.f32 %v1220_v51, %v1196_v23  ;;  %v895_v45 = vadd.f32 %v892_v5, %v858_v1  ;;  %v838_v25 = vrot.slane %v2514_v37, %v2336_v24  ;;  %v854_v6 = vmul.f32 %v845_v20, %v2421_v53 }
  0xf7   : > { %v2534_v44 = vadd.f32 %v1219_v50, %v1195_v42  ;;  %v923_v58 = vrot.slane %v908_v38, %v2344_v29  ;;  %v1468_v42 = vmul.f32 %v1462_v36, %v2433_v21  ;;  %v811_v36 = vrot.slane %v796_v46, %v2332_v22 }
  0xf8   : > { %v853_v1 = vrot.slane %v838_v25, %v2336_v24  ;;  %v2137_v23 = vcombine.low %v2451_v62, %v2451_v62  ;;  %v875_v5 = vrot.slane %v2514_v37, %v2340_v26 }
  0xf9   : > { %705 = vrot.lane.b32.xlu0 %v702_v10, %s2154_s20  ;;  %1230 = vrot.lane.b32.xlu1 %v2454_v0, %s2151_s23  ;;  %v929_v50 = vmul.f32 %v923_v58, %v2429_v7  ;;  %v1471_v51 = vadd.f32 %v1468_v42, %v1434_v47  ;;  %v820_v38 = vmul.f32 %v811_v36, %v2401_v33 }
  0xfa   : > { %v882_v58 = vrot.slane %v867_v9, %v2340_v26  ;;  %v904_v47 = vrot.slane %v2481_v52, %v2344_v29  ;;  %v856_v46 = vmul.f32 %v853_v1, %v2421_v53  ;;  %v890_v63 = vrot.slane %v875_v5, %v2340_v26 }
  0xfb   : > { %v932_v59 = vadd.f32 %v929_v50, %v895_v45  ;;  %v1508_v13 = vadd.f32 %v1505_v12, %v1471_v51  ;;  %v857_v62 = vadd.f32 %v854_v6, %v820_v38  ;;  %v912_v50 = vrot.slane %v2514_v37, %v2344_v29 }
  0xfc   : > { %v919_v52 = vrot.slane %v904_v47, %v2344_v29  ;;  %v1417_v53 = vrot.slane %v2542_v30, %v2332_v22  ;;  %v1451_v51 = vrot.slane %v2542_v30, %v2336_v24  ;;  %v2975_v6 = vmov 3  }
  0xfd   : > { %1564 = vrot.lane.b32.xlu0 %v2454_v0, %s2156_s22  ;;  %1315 = vrot.lane.b32.xlu1 %v2454_v0, %s2152_s24  ;;  %v804_v0 = vrot.slane %v2514_v37, %v2332_v22  ;;  %v893_v37 = vmul.f32 %v890_v63, %v2393_v19  ;;  %v927_v25 = vrot.slane %v912_v50, %v2344_v29  ;;  %v2977_v50 = vmov 1  }
  0xfe   : > { %v928_v20 = vmul.f32 %v919_v52, %v2429_v7  ;;  %v1432_v12 = vrot.slane %v1417_v53, %v2332_v22  ;;  %v1466_v9 = vrot.slane %v1451_v51, %v2336_v24  ;;  %v1525_v5 = vrot.slane %v2542_v30, %v2344_v29  ;;  %v1732_v53 = vld [vmem:[%s2940_s8] sm:$0xf] }
  0xff   : > { %v819_v28 = vrot.slane %v804_v0, %v2332_v22  ;;  %v2974_v0 = vmov 2  }
 0x101   : > { %1568 = vrot.lane.b32.xlu0 %v2542_v30, %s2156_s22  ;;  %953 = vrot.lane.b32.xlu1 %v702_v10, %s2153_s19  ;;  %v822_v45 = vmul.f32 %v819_v28, %v2401_v33  ;;  %v1668_v33 = vld [vmem:[%s2939_s7] sm:$0xf] }
 0x102   : > { %v1740_v28 = vld [vmem:[%s2941_s9] sm:$0xf] }
 0x105   : > { %939 = vrot.lane.b32.xlu0 %v932_v59, %s2157_s25  ;;  %1038 = vrot.lane.b32.xlu1 %v702_v10, %s2155_s21  ;;  %v1542_v10 = vmul.f32 %v2471_v8, %v2431_v17  ;;  %v891_v8 = vmul.f32 %v882_v58, %v2393_v19  ;;  %v859_v59 = vadd.f32 %v856_v46, %v822_v45 }
 0x106   : > { %v1433_v19 = vmul.f32 %v2505_v4, %v2403_v35  ;;  %v1435_v58 = vmul.f32 %v1432_v12, %v2403_v35  ;;  %v1469_v4 = vmul.f32 %v1466_v9, %v2433_v21  ;;  %v1540_v45 = vrot.slane %v1525_v5, %v2344_v29 }
 0x107   : > { %v1545_v42 = vadd.f32 %v1542_v10, %v1508_v13  ;;  %v894_v36 = vadd.f32 %v891_v8, %v857_v62  ;;  %v1467_v13 = vmul.f32 %v2476_v34, %v2433_v21  ;;  %v896_v1 = vadd.f32 %v893_v37, %v859_v59  ;;  %v1792_v8 = vld [vmem:[%s2943_s11] sm:$0xff] }
 0x108   : > { %v1472_v46 = vadd.f32 %v1469_v4, %v1435_v58  ;;  %v1541_v35 = vmul.f32 %v2468_v16, %v2431_v17  ;;  %v1543_v21 = vmul.f32 %v1540_v45, %v2431_v17  ;;  %v1856_v16 = vld [vmem:[%s2944_s12] sm:$0xff] }
 0x109   : > { %1647 = vperm.xlu0 %2085, %v1644_v15   ;;  %1232 = vrot.lane.b32.xlu1 %v2137_v23, %s2151_s23  ;;  %v1488_v15 = vrot.slane %v2542_v30, %v2340_v26  ;;  %v931_v38 = vadd.f32 %v928_v20, %v894_v36  ;;  %v1470_v47 = vadd.f32 %v1467_v13, %v1433_v19  ;;  %v1772_v59 = vld [vmem:[%s2942_s10] sm:$0xf]  ;;  %s2029_s23 = sshll.u32 %s2998_s30, 4 }
 0x10a   : > { %s467_s16 = scalar_lea.vmem %s2946_s14, %s2029_s23 }
 0x10b   : > { %v1503_v10 = vrot.slane %v1488_v15, %v2340_v26  ;;  %v1922_v15 = vld [vmem:[%s2945_s13] sm:$0xff] }
 0x10d   : > { %1552 = vrot.lane.b32.xlu0 %v1545_v42, %s2158_s28  ;;  %1317 = vrot.lane.b32.xlu1 %v2137_v23, %s2152_s24  ;;  %v1504_v42 = vmul.f32 %v2512_v2, %v2435_v39  ;;  %v1506_v30 = vmul.f32 %v1503_v10, %v2435_v39 }
 0x10e   : > { %2090 = vset.pattern.permute.xlu0 %v2974_v0 }
 0x10f   : > { %v1507_v62 = vadd.f32 %v1504_v42, %v1470_v47  ;;  %v1509_v2 = vadd.f32 %v1506_v30, %v1472_v46 }
 0x111   : > { %1701 = vperm.xlu0 %2090, %v1668_v33   ;;  %1566 = vrot.lane.b32.xlu1 %v2137_v23, %s2156_s22  ;;  %v930_v23 = vmul.f32 %v927_v25, %v2429_v7  ;;  %v2976_v7 = vmov 0   ;;  %v1544_v63 = vadd.f32 %v1541_v35, %v1507_v62  ;;  %v1546_v39 = vadd.f32 %v1543_v21, %v1509_v2  ;;  %v2672_v25 = vpop.permute.xlu0 %1319 }
 0x113   : > { %v933_v34 = vadd.f32 %v930_v23, %v896_v1 }
 0x115   : > { %2093 = vset.pattern.permute.xlu0 %v2975_v6  ;;  %937 = vrot.lane.b32.xlu1 %v931_v38, %s2157_s25  ;;  %v2677_v12 = vpop.permute.xlu0 %1581 }
 0x116   : > { %1765 = vperm.xlu0 %2093, %v1740_v28  }
 0x119   : > { %941 = vrot.lane.b32.xlu1 %v933_v34, %s2157_s25 }
 0x11a   : > { %2094 = vset.pattern.permute.xlu0 %v2976_v7 }
 0x11b   : > { %1671 = vperm.xlu0 %2094, %v1668_v33  }
 0x11d   : > { %1627 = vperm.xlu1 %2088, %v2307_v18   ;;  %v2644_v18 = vpop.permute.xlu1 %1099 }
 0x11f   : > { %1743 = vperm.xlu0 %2094, %v1740_v28  }
 0x121   : > { %1550 = vrot.lane.b32.xlu1 %v1544_v63, %s2158_s28  ;;  %v2647_v17 = vpop.permute.xlu1 %1247 }
 0x122   : > { %2089 = vset.pattern.permute.xlu1 %v2977_v50 }
 0x123   : > { %1795 = vperm.xlu0 %2094, %v1792_v8  }
 0x125   : > { %1554 = vrot.lane.b32.xlu1 %v1546_v39, %s2158_s28  ;;  %v2651_v52 = vpop.permute.xlu1 %1261 }
 0x127   : > { %2098 = vset.pattern.permute.xlu0 %v2977_v50 }
 0x128   : > { %1873 = vperm.xlu0 %2098, %v1856_v16  }
 0x129   : > { %1685 = vperm.xlu1 %2089, %v1668_v33   ;;  %v2658_v51 = vpop.permute.xlu1 %1277 }
 0x12c   : > { %2100 = vset.pattern.permute.xlu0 %v2975_v6 }
 0x12d   : > { %1841 = vperm.xlu0 %2100, %v1792_v8   ;;  %1749 = vperm.xlu1 %2089, %v1740_v28   ;;  %v2663_v36 = vpop.permute.xlu1 %1332 }
 0x131   : > { %2103 = vset.pattern.permute.xlu0 %v2976_v7  ;;  %2091 = vset.pattern.permute.xlu1 %v2974_v0 }
 0x132   : > { %1757 = vperm.xlu1 %2091, %v1740_v28  }
 0x136   : > { %2092 = vset.pattern.permute.xlu1 %v2975_v6 }
 0x137   : > { %1717 = vperm.xlu1 %2092, %v1668_v33   ;;  %v2666_v33 = vpop.permute.xlu1 %1293 }
 0x13b   : > { %2095 = vset.pattern.permute.xlu1 %v2976_v7  ;;  %v2669_v37 = vpop.permute.xlu1 %1378 }
 0x13c   : > { %1735 = vperm.xlu1 %2095, %v1732_v53  }
 0x13f   : > { %v2674_v20 = vpop.permute.xlu1 %1595 }
 0x140   : > { %1775 = vperm.xlu1 %2095, %v1772_v59  }
 0x143   : > { %v2679_v9 = vpop.permute.xlu1 %1611 }
 0x144   : > { %2096 = vset.pattern.permute.xlu1 %v2977_v50 }
 0x145   : > { %1809 = vperm.xlu1 %2096, %v1792_v8  }
 0x149   : > { %2097 = vset.pattern.permute.xlu1 %v2976_v7 }
 0x14a   : > { %1859 = vperm.xlu1 %2097, %v1856_v16  }
 0x14e   : > { %2099 = vset.pattern.permute.xlu1 %v2974_v0  ;;  %v2978_v0 = vlaneseq }
 0x14f   : > { %1825 = vperm.xlu1 %2099, %v1792_v8  }
 0x150   : > { %v597_v28 = vand.u32 127, %v2978_v0 }
 0x152   : > { %v598_v38 = vadd.s32 128, %v597_v28 }
 0x153   : > { %1889 = vperm.xlu1 %2099, %v1856_v16  }
 0x154   : > { %v600_v5 = vand.u32 15, %v598_v38 }
 0x156   : > { %vm2690_vm2 = vcmp.gt.s32.totalorder %v600_v5, 0  ;;  %vm2714_vm5 = vcmp.lt.s32.totalorder %v600_v5, 15 }
 0x157   : > { %2101 = vset.pattern.permute.xlu1 %v2975_v6  ;;  %v599_v6 = vand.u32 15, %v597_v28 }
 0x158   : > { %1905 = vperm.xlu1 %2101, %v1856_v16  }
 0x159   : > { %vm2686_vm1 = vcmp.gt.s32.totalorder %v599_v6, 0  ;;  %vm2709_vm4 = vcmp.lt.s32.totalorder %v599_v6, 15 }
 0x15c   : > { %2102 = vset.pattern.permute.xlu1 %v2976_v7 }
 0x15d   : > { %1925 = vperm.xlu1 %2102, %v1922_v15  }
 0x15f   : > { %v952_v19 = vpop.permute.xlu0 %951  ;;  %v704_v13 = vpop.permute.xlu1 %703 }
 0x163   : > { %v1037_v1 = vpop.permute.xlu0 %1036  ;;  %v708_v23 = vpop.permute.xlu1 %707 }
 0x167   : > { %v1041_v10 = vpop.permute.xlu0 %1040  ;;  %v956_v58 = vpop.permute.xlu1 %955 }
 0x16b   : > { %v706_v34 = vpop.permute.xlu0 %705  ;;  %v1231_v42 = vpop.permute.xlu1 %1230 }
 0x16c   : > { %v710_v7 = vsel %vm709_vm0, %v704_v13, %v706_v34  ;;  %v711_v45 = vsel %vm709_vm0, %v706_v34, %v708_v23 }
 0x16d   : > { %v714_v46 = vsel %vm2686_vm1, %v710_v7, 0.0  ;;  %v715_v30 = vsel %vm2690_vm2, %v711_v45, 0.0 }
 0x16e   : > { %v725_v62 = vrot.slane %v714_v46, %v2332_v22  ;;  %v739_v35 = vrot.slane %v714_v46, %v2336_v24  ;;  %v729_v21 = vrot.slane %v715_v30, %v2332_v22  ;;  %v743_v2 = vrot.slane %v715_v30, %v2336_v24 }
 0x16f   : > { %v2702_v63 = vpop.permute.xlu1 %1315  ;;  %v755_v53 = vrot.slane %v714_v46, %v2340_v26  ;;  %v759_v28 = vrot.slane %v715_v30, %v2340_v26 }
 0x170   : > { %v730_v8 = vmul.f32 %v725_v62, %v2399_v32  ;;  %v744_v50 = vmul.f32 %v739_v35, %v2395_v27  ;;  %v731_v39 = vmul.f32 %v729_v21, %v2399_v32  ;;  %v745_v16 = vmul.f32 %v743_v2, %v2395_v27 }
 0x171   : > { %v771_v32 = vrot.slane %v714_v46, %v2344_v29  ;;  %v760_v6 = vmul.f32 %v755_v53, %v2397_v31  ;;  %v761_v62 = vmul.f32 %v759_v28, %v2397_v31 }
 0x172   : > { %v746_v13 = vadd.f32 %v744_v50, %v730_v8  ;;  %v747_v7 = vadd.f32 %v745_v16, %v731_v39 }
 0x173   : > { %v954_v59 = vpop.permute.xlu1 %953  ;;  %v776_v8 = vmul.f32 %v771_v32, %v2427_v60 }
 0x174   : > { %v958_v0 = vsel %vm957_vm3, %v952_v19, %v954_v59  ;;  %v959_v23 = vsel %vm957_vm3, %v954_v59, %v956_v58  ;;  %v775_v19 = vrot.slane %v715_v30, %v2344_v29  ;;  %v762_v5 = vadd.f32 %v760_v6, %v746_v13 }
 0x175   : > { %v962_v27 = vsel %vm2709_vm4, %v958_v0, 0.0  ;;  %v2725_v45 = vsel %vm2714_vm5, %v959_v23, 0.0  ;;  %v763_v50 = vadd.f32 %v761_v62, %v747_v7  ;;  %v1565_v62 = vpop.permute.xlu0 %1564 }
 0x176   : > { %v974_v58 = vrot.slane %v962_v27, %v2332_v22  ;;  %v988_v46 = vrot.slane %v962_v27, %v2336_v24  ;;  %v978_v30 = vrot.slane %v2725_v45, %v2332_v22  ;;  %v992_v39 = vrot.slane %v2725_v45, %v2336_v24 }
 0x177   : > { %v1039_v34 = vpop.permute.xlu1 %1038  ;;  %v1004_v16 = vrot.slane %v962_v27, %v2340_v26  ;;  %v1008_v31 = vrot.slane %v2725_v45, %v2340_v26  ;;  %v2738_v53 = vadd.f32 %v776_v8, %v762_v5  ;;  %v1020_v13 = vrot.slane %v962_v27, %v2344_v29 }
 0x178   : > { %v1043_v35 = vsel %vm1042_vm6, %v1037_v1, %v1039_v34  ;;  %v1044_v21 = vsel %vm1042_vm6, %v1039_v34, %v1041_v10  ;;  %v777_v1 = vmul.f32 %v775_v19, %v2427_v60  ;;  %v979_v10 = vmul.f32 %v974_v58, %v2439_v49 }
 0x179   : > { %v993_v59 = vmul.f32 %v988_v46, %v2437_v40  ;;  %v1047_v0 = vsel %vm2686_vm1, %v1043_v35, 0.0  ;;  %v1048_v28 = vsel %vm2690_vm2, %v1044_v21, 0.0  ;;  %v2752_v60 = vmul.f32 %v978_v30, %v2439_v49  ;;  %v1569_v41 = vpop.permute.xlu0 %1568 }
 0x17a   : > { %v2749_v6 = vadd.f32 %v777_v1, %v763_v50  ;;  %v2755_v7 = vmul.f32 %v992_v39, %v2437_v40  ;;  %v1009_v19 = vmul.f32 %v1004_v16, %v2441_v54  ;;  %v1059_v27 = vrot.slane %v1047_v0, %v2332_v22 }
 0x17b   : > { %v1233_v2 = vpop.permute.xlu1 %1232  ;;  %v2771_v40 = vmul.f32 %v1008_v31, %v2441_v54  ;;  %v1073_v58 = vrot.slane %v1047_v0, %v2336_v24  ;;  %v1077_v46 = vrot.slane %v1048_v28, %v2336_v24  ;;  %v995_v35 = vadd.f32 %v993_v59, %v979_v10 }
 0x17c   : > { %v1237_v23 = vsel %vm1236_vm7, %v1231_v42, %v1233_v2  ;;  %v1238_v32 = vsel %vm1236_vm7, %v1233_v2, %v2473_v11  ;;  %v1063_v42 = vrot.slane %v1048_v28, %v2332_v22  ;;  %v1089_v21 = vrot.slane %v1047_v0, %v2340_v26 }
 0x17d   : > { %v2764_v11 = vsel %vm2709_vm4, %v1237_v23, 0.0  ;;  %v2768_v49 = vsel %vm2714_vm5, %v1238_v32, 0.0  ;;  %v1093_v2 = vrot.slane %v1048_v28, %v2340_v26  ;;  %v1025_v30 = vmul.f32 %v1020_v13, %v2445_v55 }
 0x17e   : > { %v1253_v54 = vrot.slane %v2764_v11, %v2332_v22  ;;  %v1257_v39 = vrot.slane %v2768_v49, %v2332_v22  ;;  %v1267_v16 = vrot.slane %v2764_v11, %v2336_v24  ;;  %v1271_v31 = vrot.slane %v2768_v49, %v2336_v24 }
 0x17f   : > { %v1318_v34 = vpop.permute.xlu1 %1317  ;;  %v1064_v1 = vmul.f32 %v1059_v27, %v2449_v57  ;;  %v1105_v10 = vrot.slane %v1047_v0, %v2344_v29  ;;  %v1109_v59 = vrot.slane %v1048_v28, %v2344_v29  ;;  %v1078_v13 = vmul.f32 %v1073_v58, %v2443_v14 }
 0x180   : > { %v1323_v8 = vsel %vm1321_vm8, %v1318_v34, %v2672_v25  ;;  %v1065_v25 = vmul.f32 %v1063_v42, %v2449_v57  ;;  %v1079_v23 = vmul.f32 %v1077_v46, %v2443_v14  ;;  %v1322_v32 = vsel %vm1321_vm8, %v2702_v63, %v1318_v34 }
 0x181   : > { %v2798_v5 = vsel %vm2690_vm2, %v1323_v8, 0.0  ;;  %v1094_v27 = vmul.f32 %v1089_v21, %v2456_v3  ;;  %v1095_v57 = vmul.f32 %v1093_v2, %v2456_v3  ;;  %v1283_v0 = vrot.slane %v2764_v11, %v2340_v26 }
 0x182   : > { %v1287_v28 = vrot.slane %v2768_v49, %v2340_v26  ;;  %v1258_v14 = vmul.f32 %v1253_v54, %v2647_v17  ;;  %v1259_v63 = vmul.f32 %v1257_v39, %v2647_v17  ;;  %v1272_v47 = vmul.f32 %v1267_v16, %v2651_v52 }
 0x183   : > { %v1567_v50 = vpop.permute.xlu1 %1566  ;;  %v1273_v34 = vmul.f32 %v1271_v31, %v2651_v52  ;;  %v1110_v58 = vmul.f32 %v1105_v10, %v2644_v18  ;;  %v2813_v3 = vsel %vm2686_vm1, %v1322_v32, 0.0  ;;  %v1342_v46 = vrot.slane %v2798_v5, %v2332_v22 }
 0x184   : > { %v1356_v21 = vrot.slane %v2798_v5, %v2336_v24  ;;  %v1080_v2 = vadd.f32 %v1078_v13, %v1064_v1  ;;  %v1081_v8 = vadd.f32 %v1079_v23, %v1065_v25  ;;  %v1111_v17 = vmul.f32 %v1109_v59, %v2644_v18  ;;  %v940_v25 = vpop.permute.xlu0 %939 }
 0x185   : > { %v1299_v54 = vrot.slane %v2764_v11, %v2344_v29  ;;  %v1288_v52 = vmul.f32 %v1283_v0, %v2658_v51  ;;  %v1289_v39 = vmul.f32 %v1287_v28, %v2658_v51  ;;  %v1303_v4 = vrot.slane %v2768_v49, %v2344_v29 }
 0x186   : > { %v1011_v16 = vadd.f32 %v1009_v19, %v995_v35  ;;  %v1274_v31 = vadd.f32 %v1272_v47, %v1258_v14  ;;  %v1275_v10 = vadd.f32 %v1273_v34, %v1259_v63  ;;  %v1338_v32 = vrot.slane %v2813_v3, %v2332_v22 }
 0x187   : > { %v938_v42 = vpop.permute.xlu1 %937  ;;  %v1352_v1 = vrot.slane %v2813_v3, %v2336_v24  ;;  %v1344_v11 = vmul.f32 %v1342_v46, %v2663_v36  ;;  %v1358_v59 = vmul.f32 %v1356_v21, %v2447_v56  ;;  %v1372_v51 = vrot.slane %v2798_v5, %v2340_v26 }
 0x188   : > { %v1571_v49 = vsel %vm1570_vm9, %v1565_v62, %v1567_v50  ;;  %v1572_v19 = vsel %vm1570_vm9, %v1567_v50, %v1569_v41  ;;  %v1096_v35 = vadd.f32 %v1094_v27, %v1080_v2  ;;  %v944_v13 = vsel %vm943_vm10, %v938_v42, %v940_v25  ;;  %v1648_v38 = vpop.permute.xlu0 %1647 }
 0x189   : > { %v996_v23 = vadd.f32 %v2755_v7, %v2752_v60  ;;  %v1027_v0 = vadd.f32 %v1025_v30, %v1011_v16  ;;  %v948_v28 = vadd.f32 %v944_v13, %v2738_v53  ;;  %v1097_v14 = vadd.f32 %v1095_v57, %v1081_v8 }
 0x18a   : > { %v1575_v47 = vsel %vm2709_vm4, %v1571_v49, 0.0  ;;  %v2987_v41 = vrot.slane %v2725_v45, %v2344_v29  ;;  %v1343_v60 = vmul.f32 %v1338_v32, %v2663_v36  ;;  %v1368_v53 = vrot.slane %v2813_v3, %v2340_v26 }
 0x18b   : > { %v942_v18 = vpop.permute.xlu1 %941  ;;  %v1012_v34 = vadd.f32 %v2771_v40, %v996_v23  ;;  %v1388_v7 = vrot.slane %v2798_v5, %v2344_v29  ;;  %v1029_v30 = vadd.f32 %v1027_v0, %v948_v28  ;;  %v1357_v15 = vmul.f32 %v1352_v1, %v2447_v56 }
 0x18c   : > { %v945_v63 = vsel %vm943_vm10, %v940_v25, %v942_v18  ;;  %v1026_v62 = vmul.f32 %v2987_v41, %v2445_v55  ;;  %v1374_v40 = vmul.f32 %v1372_v51, %v2484_v61  ;;  %v1112_v27 = vadd.f32 %v1110_v58, %v1096_v35  ;;  %v1553_v35 = vpop.permute.xlu0 %1552 }
 0x18d   : > { %v949_v50 = vadd.f32 %v945_v63, %v2749_v6  ;;  %v1576_v55 = vsel %vm2714_vm5, %v1572_v19, 0.0  ;;  %v1587_v45 = vrot.slane %v1575_v47, %v2332_v22  ;;  %v1601_v36 = vrot.slane %v1575_v47, %v2336_v24 }
 0x18e   : > { %v1028_v57 = vadd.f32 %v1026_v62, %v1012_v34  ;;  %v1113_v6 = vadd.f32 %v1111_v17, %v1097_v14  ;;  %v1114_v42 = vadd.f32 %v1112_v27, %v1029_v30  ;;  %v1291_v21 = vadd.f32 %v1289_v39, %v1275_v10 }
 0x18f   : > { %v1360_v2 = vadd.f32 %v1358_v59, %v1344_v11  ;;  %v1304_v5 = vmul.f32 %v1299_v54, %v2666_v33  ;;  %v1305_v56 = vmul.f32 %v1303_v4, %v2666_v33  ;;  %v1373_v8 = vmul.f32 %v1368_v53, %v2484_v61 }
 0x190   : > { %v1030_v46 = vadd.f32 %v1028_v57, %v949_v50  ;;  %v1384_v58 = vrot.slane %v2813_v3, %v2344_v29  ;;  %v1290_v32 = vadd.f32 %v1288_v52, %v1274_v31  ;;  %v1359_v1 = vadd.f32 %v1357_v15, %v1343_v60  ;;  %v2880_v60 = vpop.permute.xlu0 %1701 }
 0x191   : > { %v1376_v18 = vadd.f32 %v1374_v40, %v1360_v2  ;;  %v1591_v17 = vrot.slane %v1576_v55, %v2332_v22  ;;  %v1592_v25 = vmul.f32 %v1587_v45, %v2677_v12  ;;  %v1605_v39 = vrot.slane %v1576_v55, %v2336_v24 }
 0x192   : > { %v1115_v16 = vadd.f32 %v1113_v6, %v1030_v46  ;;  %v1606_v54 = vmul.f32 %v1601_v36, %v2674_v20  ;;  %v1223_v33 = vadd.f32 %v2534_v44, %v1114_v42  ;;  %v1307_v4 = vadd.f32 %v1305_v56, %v1291_v21 }
 0x193   : > { %v1390_v61 = vmul.f32 %v1388_v7, %v2669_v37  ;;  %v1617_v10 = vrot.slane %v1575_v47, %v2340_v26  ;;  %v1306_v52 = vadd.f32 %v1304_v5, %v1290_v32  ;;  %v1375_v31 = vadd.f32 %v1373_v8, %v1359_v1 }
 0x194   : > { %v1224_v3 = vadd.f32 %v2538_v48, %v1115_v16  ;;  %v1593_v51 = vmul.f32 %v1591_v17, %v2677_v12  ;;  %v1607_v49 = vmul.f32 %v1605_v39, %v2674_v20  ;;  %v1608_v19 = vadd.f32 %v1606_v54, %v1592_v25  ;;  %v2989_v39 = vld [vmem:[#allocation5_spill] sm:$0xff] }
 0x195   : > { %v1392_v11 = vadd.f32 %v1390_v61, %v1376_v18  ;;  %v1633_v44 = vrot.slane %v1575_v47, %v2344_v29  ;;  %v1389_v23 = vmul.f32 %v1384_v58, %v2669_v37  ;;  %v1308_v0 = vadd.f32 %v1306_v52, %v1223_v33  ;;  %v2988_v18 = vld [vmem:[#allocation3_spill] sm:$0xff]  ;;  %v2990_v33 = vld [vmem:[#allocation4_spill] sm:$0xff] }
 0x196   : > { %v1309_v59 = vadd.f32 %v1307_v4, %v1224_v3  ;;  %v1621_v48 = vrot.slane %v1576_v55, %v2340_v26  ;;  %v1622_v14 = vmul.f32 %v1617_v10, %v2679_v9  ;;  %v1609_v41 = vadd.f32 %v1607_v49, %v1593_v51  ;;  %v2991_v10 = vld [vmem:[#allocation6_spill] sm:$0xff]  ;;  %v2993_v49 = vld [vmem:[#allocation8_spill] sm:$0xff] }
 0x197   : > { %v1391_v34 = vadd.f32 %v1389_v23, %v1375_v31  ;;  %v1637_v20 = vrot.slane %v1576_v55, %v2344_v29  ;;  %v1766_v55 = vpop.permute.xlu0 %1765 }
 0x198   : > { %v1394_v28 = vadd.f32 %v1392_v11, %v1309_v59  ;;  %v1624_v12 = vadd.f32 %v1622_v14, %v1608_v19  ;;  %v1623_v37 = vmul.f32 %v1621_v48, %v2679_v9  ;;  %v2992_v11 = vld [vmem:[#allocation7_spill] sm:$0xff] }
 0x199   : > { %v1393_v50 = vadd.f32 %v1391_v34, %v1308_v0  ;;  %v2995_v34 = vld [vmem:[#allocation10_spill] sm:$0xff] }
 0x19a   : > { %v1625_v15 = vadd.f32 %v1623_v37, %v1609_v41 }
 0x19b   : > { %v1672_v56 = vpop.permute.xlu0 %1671 }
 0x19c   : > { %v1628_v13 = vpop.permute.xlu1 %1627 }
 0x19d   : > { %v1638_v63 = vmul.f32 %v1633_v44, %v1628_v13  ;;  %v1639_v53 = vmul.f32 %v1637_v20, %v1628_v13 }
 0x19f   : > { %v1640_v7 = vadd.f32 %v1638_v63, %v1624_v12  ;;  %v1641_v45 = vadd.f32 %v1639_v53, %v1625_v15  ;;  %v1744_v8 = vpop.permute.xlu0 %1743  ;;  %v2996_v15 = vld [vmem:[#allocation11_spill] sm:$0xff] }
 0x1a0   : > { %v1551_v62 = vpop.permute.xlu1 %1550  ;;  %v1746_v17 = vmul.f32 %v1744_v8, %v2988_v18  ;;  %v1747_v4 = vmul.f32 %v1744_v8, %v2990_v33 }
 0x1a1   : > { %v1557_v47 = vsel %vm1556_vm11, %v1551_v62, %v1553_v35 }
 0x1a2   : > { %v1561_v30 = vadd.f32 %v1557_v47, %v1393_v50 }
 0x1a4   : > { %v1642_v40 = vadd.f32 %v1640_v7, %v1561_v30  ;;  %v1555_v27 = vpop.permute.xlu1 %1554 }
 0x1a5   : > { %v1558_v57 = vsel %vm1556_vm11, %v1553_v35, %v1555_v27  ;;  %v2994_v35 = vld [vmem:[#allocation9_spill] sm:$0xff] }
 0x1a6   : > { %v1650_v36 = vadd.f32 %v1648_v38, %v1642_v40  ;;  %v1562_v6 = vadd.f32 %v1558_v57, %v1394_v28  ;;  %v1769_v13 = vmul.f32 %v1766_v55, %v2994_v35 }
 0x1a8   : > { %v2022_v42 = vmul.f32 -1.442695, %v1650_v36  ;;  %v1643_v46 = vadd.f32 %v1641_v45, %v1562_v6  ;;  %v1686_v21 = vpop.permute.xlu1 %1685 }
 0x1aa   : > { %2121 = vpow2.f32 %v2022_v42  ;;  %v1651_v2 = vadd.f32 %v1648_v38, %v1643_v46 }
 0x1ac   : > { %v2023_v5 = vmul.f32 -1.442695, %v1651_v2  ;;  %v1750_v9 = vpop.permute.xlu1 %1749 }
 0x1ad   : > { %v1752_v1 = vmul.f32 %v1750_v9, %v2364_v43  ;;  %v1753_v54 = vmul.f32 %v1750_v9, %v2989_v39  ;;  %v1768_v43 = vmul.f32 %v1766_v55, %v2993_v49 }
 0x1ae   : > { %2123 = vpow2.f32 %v2023_v5 }
 0x1af   : > { %v1754_v3 = vadd.f32 %v1752_v1, %v1746_v17  ;;  %v1755_v31 = vadd.f32 %v1753_v54, %v1747_v4 }
 0x1b1   : > { %v1758_v58 = vpop.permute.xlu1 %1757 }
 0x1b2   : > { %v1760_v52 = vmul.f32 %v1758_v58, %v2991_v10  ;;  %v1761_v59 = vmul.f32 %v1758_v58, %v2992_v11 }
 0x1b4   : > { %v2122_v16 = vpop.eup %2121  ;;  %v1762_v19 = vadd.f32 %v1760_v52, %v1754_v3  ;;  %v1763_v44 = vadd.f32 %v1761_v59, %v1755_v31 }
 0x1b5   : > { %v1658_v32 = vadd.f32 1.0, %v2122_v16 }
 0x1b6   : > { %v1718_v25 = vpop.permute.xlu1 %1717  ;;  %v1770_v28 = vadd.f32 %v1768_v43, %v1762_v19  ;;  %v1771_v14 = vadd.f32 %v1769_v13, %v1763_v44 }
 0x1b7   : > { %2125 = vrcp.f32 %v1658_v32 }
 0x1b8   : > { %v2124_v61 = vpop.eup %2123 }
 0x1b9   : > { %v1659_v38 = vadd.f32 1.0, %v2124_v61 }
 0x1bb   : > { %2127 = vrcp.f32 %v1659_v38  ;;  %v1736_v51 = vpop.permute.xlu1 %1735 }
 0x1bf   : > { %v1776_v23 = vpop.permute.xlu1 %1775 }
 0x1c0   : > { %v1778_v63 = vadd.f32 %v1776_v23, %v1770_v28  ;;  %v1779_v62 = vadd.f32 %v1776_v23, %v1771_v14 }
 0x1c1   : > { %v2126_v0 = vpop.eup %2125 }
 0x1c2   : > { %v1664_v48 = vmul.f32 %v2126_v0, %v1650_v36  ;;  %v1788_v30 = vmul.f32 0.1, %v1778_v63  ;;  %vm1786_vm12 = vcmp.gt.f32.partialorder %v1778_v63, 0.0  ;;  %vm1787_vm13 = vcmp.gt.f32.partialorder %v1779_v62, 0.0 }
 0x1c3   : > { %v1789_v45 = vmul.f32 0.1, %v1779_v62 }
 0x1c4   : > { %v1666_v41 = vadd.f32 %v1664_v48, %v2995_v34  ;;  %v2894_v12 = vpop.permute.xlu1 %1809  ;;  %v1790_v8 = vsel %vm1786_vm12, %v1778_v63, %v1788_v30 }
 0x1c5   : > { %v2128_v20 = vpop.eup %2127  ;;  %v1791_v18 = vsel %vm1787_vm13, %v1779_v62, %v1789_v45  ;;  %v1879_v4 = vrot.slane %v1790_v8, %v2336_v24  ;;  %v1911_v0 = vrot.slane %v1790_v8, %v2344_v29 }
 0x1c6   : > { %v1707_v50 = vrot.slane %v1666_v41, %v2340_v26  ;;  %v1665_v47 = vmul.f32 %v2128_v20, %v1651_v2  ;;  %v1691_v37 = vrot.slane %v1666_v41, %v2336_v24  ;;  %v1677_v53 = vrot.slane %v1666_v41, %v2332_v22  ;;  %v1796_v2 = vpop.permute.xlu0 %1795 }
 0x1c7   : > { %v1723_v7 = vrot.slane %v1666_v41, %v2344_v29  ;;  %v1883_v10 = vrot.slane %v1791_v18, %v2336_v24  ;;  %v1869_v49 = vrot.slane %v1791_v18, %v2332_v22  ;;  %v1899_v41 = vrot.slane %v1791_v18, %v2340_v26 }
 0x1c8   : > { %v1667_v40 = vadd.f32 %v1665_v47, %v2996_v15  ;;  %v1696_v27 = vmul.f32 %v1691_v37, %v1686_v21  ;;  %v1682_v57 = vmul.f32 %v1677_v53, %v1672_v56  ;;  %v1712_v6 = vmul.f32 %v1707_v50, %v2880_v60 }
 0x1c9   : > { %v1860_v36 = vpop.permute.xlu1 %1859  ;;  %v1728_v5 = vmul.f32 %v1723_v7, %v1718_v25 }
 0x1ca   : > { %v1695_v55 = vrot.slane %v1667_v40, %v2336_v24  ;;  %v1681_v42 = vrot.slane %v1667_v40, %v2332_v22  ;;  %v1698_v46 = vadd.f32 %v1696_v27, %v1682_v57  ;;  %v1711_v9 = vrot.slane %v1667_v40, %v2340_v26  ;;  %v1874_v52 = vpop.permute.xlu0 %1873 }
 0x1cb   : > { %v1727_v32 = vrot.slane %v1667_v40, %v2344_v29  ;;  %v1884_v59 = vmul.f32 %v1879_v4, %v1874_v52  ;;  %v1885_v35 = vmul.f32 %v1883_v10, %v1874_v52 }
 0x1cc   : > { %v1697_v58 = vmul.f32 %v1695_v55, %v1686_v21  ;;  %v1683_v16 = vmul.f32 %v1681_v42, %v1672_v56  ;;  %v1714_v1 = vadd.f32 %v1712_v6, %v1698_v46  ;;  %v1713_v39 = vmul.f32 %v1711_v9, %v2880_v60 }
 0x1cd   : > { %v1729_v61 = vmul.f32 %v1727_v32, %v1718_v25  ;;  %v1865_v56 = vrot.slane %v1790_v8, %v2332_v22  ;;  %v1895_v60 = vrot.slane %v1790_v8, %v2340_v26 }
 0x1ce   : > { %v1699_v17 = vadd.f32 %v1697_v58, %v1683_v16  ;;  %v1730_v54 = vadd.f32 %v1728_v5, %v1714_v1  ;;  %v1826_v33 = vpop.permute.xlu1 %1825  ;;  %v1842_v20 = vpop.permute.xlu0 %1841 }
 0x1cf   : > { %v1870_v25 = vmul.f32 %v1865_v56, %v1860_v36 }
 0x1d0   : > { %v1715_v38 = vadd.f32 %v1713_v39, %v1699_v17  ;;  %v1738_v3 = vadd.f32 %v1736_v51, %v1730_v54 }
 0x1d1   : > { %v1886_v47 = vadd.f32 %v1884_v59, %v1870_v25 }
 0x1d2   : > { %v1731_v31 = vadd.f32 %v1729_v61, %v1715_v38  ;;  %vm1780_vm14 = vcmp.gt.f32.partialorder %v1738_v3, 0.0  ;;  %v1782_v21 = vmul.f32 0.1, %v1738_v3  ;;  %v1890_v11 = vpop.permute.xlu1 %1889 }
 0x1d3   : > { %v1900_v48 = vmul.f32 %v1895_v60, %v1890_v11  ;;  %v1901_v27 = vmul.f32 %v1899_v41, %v1890_v11 }
 0x1d4   : > { %v1739_v43 = vadd.f32 %v1736_v51, %v1731_v31  ;;  %v1784_v19 = vsel %vm1780_vm14, %v1738_v3, %v1782_v21  ;;  %v1871_v51 = vmul.f32 %v1869_v49, %v1860_v36  ;;  %v1915_v36 = vrot.slane %v1791_v18, %v2344_v29 }
 0x1d5   : > { %v1801_v13 = vrot.slane %v1784_v19, %v2332_v22  ;;  %v1815_v44 = vrot.slane %v1784_v19, %v2336_v24  ;;  %v1831_v23 = vrot.slane %v1784_v19, %v2340_v26  ;;  %v1847_v14 = vrot.slane %v1784_v19, %v2344_v29 }
 0x1d6   : > { %vm1781_vm15 = vcmp.gt.f32.partialorder %v1739_v43, 0.0  ;;  %v1783_v28 = vmul.f32 0.1, %v1739_v43  ;;  %v1902_v57 = vadd.f32 %v1900_v48, %v1886_v47  ;;  %v1887_v5 = vadd.f32 %v1885_v35, %v1871_v51 }
 0x1d7   : > { %v1806_v63 = vmul.f32 %v1801_v13, %v1796_v2  ;;  %v1820_v34 = vmul.f32 %v1815_v44, %v2894_v12  ;;  %v1906_v62 = vpop.permute.xlu1 %1905  ;;  %v1836_v37 = vmul.f32 %v1831_v23, %v1826_v33  ;;  %v1852_v45 = vmul.f32 %v1847_v14, %v1842_v20 }
 0x1d8   : > { %v1785_v50 = vsel %vm1781_vm15, %v1739_v43, %v1783_v28  ;;  %v1916_v53 = vmul.f32 %v1911_v0, %v1906_v62  ;;  %v1917_v9 = vmul.f32 %v1915_v36, %v1906_v62 }
 0x1d9   : > { %v1805_v7 = vrot.slane %v1785_v50, %v2332_v22  ;;  %v1819_v30 = vrot.slane %v1785_v50, %v2336_v24  ;;  %v1822_v15 = vadd.f32 %v1820_v34, %v1806_v63  ;;  %v1835_v40 = vrot.slane %v1785_v50, %v2340_v26 }
 0x1da   : > { %v1851_v46 = vrot.slane %v1785_v50, %v2344_v29  ;;  %v1918_v24 = vadd.f32 %v1916_v53, %v1902_v57  ;;  %v1903_v26 = vadd.f32 %v1901_v27, %v1887_v5 }
 0x1db   : > { %v1807_v6 = vmul.f32 %v1805_v7, %v1796_v2  ;;  %v1821_v55 = vmul.f32 %v1819_v30, %v2894_v12  ;;  %v1838_v42 = vadd.f32 %v1836_v37, %v1822_v15  ;;  %v1837_v22 = vmul.f32 %v1835_v40, %v1826_v33 }
 0x1dc   : > { %v1926_v16 = vpop.permute.xlu1 %1925  ;;  %v1853_v1 = vmul.f32 %v1851_v46, %v1842_v20  ;;  %v1919_v18 = vadd.f32 %v1917_v9, %v1903_v26 }
 0x1dd   : > { %v1823_v8 = vadd.f32 %v1821_v55, %v1807_v6  ;;  %v1854_v58 = vadd.f32 %v1852_v45, %v1838_v42 }
 0x1df   : > { %v1839_v32 = vadd.f32 %v1837_v22, %v1823_v8  ;;  %v1920_v17 = vadd.f32 %v1918_v24, %v1854_v58 }
 0x1e1   : > { %v1855_v39 = vadd.f32 %v1853_v1, %v1839_v32  ;;  %v1928_v2 = vadd.f32 %v1926_v16, %v1920_v17 }
 0x1e3   : > { %v1921_v54 = vadd.f32 %v1919_v18, %v1855_v39  ;;  %v2024_v12 = vmul.f32 -1.442695, %v1928_v2 }
 0x1e5   : > { %v1929_v4 = vadd.f32 %v1926_v16, %v1921_v54  ;;  %2129 = vpow2.f32 %v2024_v12 }
 0x1e7   : > { %v2025_v29 = vmul.f32 -1.442695, %v1929_v4 }
 0x1e9   : > { %2131 = vpow2.f32 %v2025_v29 }
 0x1ef   : > { %v2130_v61 = vpop.eup %2129 }
 0x1f0   : > { %v1936_v38 = vadd.f32 1.0, %v2130_v61 }
 0x1f2   : > { %2133 = vrcp.f32 %v1936_v38 }
 0x1f3   : > { %v2132_v33 = vpop.eup %2131 }
 0x1f4   : > { %v1937_v3 = vadd.f32 1.0, %v2132_v33 }
 0x1f6   : > { %2135 = vrcp.f32 %v1937_v3 }
 0x1fc   : > { %v2134_v10 = vpop.eup %2133 }
 0x1fd   : > { %v1942_v52 = vmul.f32 %v2134_v10, %v1928_v2 }
 0x1ff   : > { %1944 = vst [vmem:[%s467_s16] sm:$0xff] %v1942_v52 }
 0x200   : > { %v2136_v31 = vpop.eup %2135 }
 0x201   : > { %v1943_v21 = vmul.f32 %v2136_v31, %v1929_v4 }
 0x203   : > { %1945 = vst [vmem:[%s467_s16 + $0x8] sm:$0xff] %v1943_v21 }
 0x204 PF: > { %s24_s29 = sadd.s32 1, %s2144_s29  }
 0x205   : > { %p21_p4 = scmp.ge.s32.totalorder %s24_s29, 4  }
 0x207   :  { %23 = sbr.rel (!%p21_p4) target bundleno = 1 (0x1), region = 114 }

</bundles_post_ra>
